<compile_context>
chip_gen: v7x
topology: tpu7x:2x2x1
jax: 0.10.0
libtpu: 0.0.40
codegen_flags: <defaults>
</compile_context>

<pallas_src>
import functools

import jax
import jax.numpy as jnp
from jax import lax
from jax.experimental import pallas as pl
from jax.experimental.pallas import tpu as pltpu

LN_EPS = 1e-12
LOGIT_PAD = 128  # lane-dense classifier output width (sliced to num_labels outside)


# ---------------------------------------------------------------------------
# Helpers
# ---------------------------------------------------------------------------
def _layernorm(x, g, b):
    mu = jnp.mean(x, axis=-1, keepdims=True)
    var = jnp.mean((x - mu) ** 2, axis=-1, keepdims=True)
    return (x - mu) * lax.rsqrt(var + LN_EPS) * g + b


def _gelu(x):
    # TODO(synk): HF BERT default is exact (erf) GELU; tanh approximation used here.
    return 0.5 * x * (1.0 + jnp.tanh(
        0.7978845608028654 * (x + 0.044715 * x * x * x)))


# ---------------------------------------------------------------------------
# Fused BERT encoder + classifier kernel (single invocation, layers unrolled)
# ---------------------------------------------------------------------------
def _bert_fused_kernel(
    emb_ref, embln_ref,
    wq_ref, bq_ref, wk_ref, bk_ref, wvo_ref,
    w1_ref, b1_ref, w2_ref, vecs_ref,
    wc_ref, bc_ref,
    out_ref,
    *, S, L, nH, dh,
):
    M, H = emb_ref.shape

    # Embedding LayerNorm.
    el = embln_ref[...]
    x = _layernorm(emb_ref[...], el[0:1, :], el[1:2, :])

    # Block-diagonal additive mask: tokens attend only within their own
    # sequence (the B sequences are stacked into one M = B*S token slab).
    # Built ONCE per call (layers are unrolled below); shift instead of
    # integer division when S is a power of two.
    # TODO(synk): no padding attention_mask support (synthetic inputs are unpadded).
    if (S & (S - 1)) == 0:
        sh = S.bit_length() - 1
        rb = lax.broadcasted_iota(jnp.int32, (M, M), 0) >> sh
        cb = lax.broadcasted_iota(jnp.int32, (M, M), 1) >> sh
    else:
        rb = lax.broadcasted_iota(jnp.int32, (M, M), 0) // S
        cb = lax.broadcasted_iota(jnp.int32, (M, M), 1) // S
    neg = jnp.where(rb == cb, 0.0, -1e30).astype(jnp.float32)

    for l in range(L):                       # static unroll: no grid, no pl.when
        vl = vecs_ref[l]                     # (6, H): bvo, ln1_g, ln1_b, b2, ln2_g, ln2_b

        # ---- self-attention --------------------------------------------------
        # Per-head weights (static leading-dim ref indexing -> no lane slicing).
        # 1/sqrt(dh) is folded into wq/bq at pack time.  Wvo_h = Wv_h @ Wo_h is
        # pre-merged, so ctx accumulation replaces concat + output projection
        # (mathematically identical to the reference up to fp rounding).
        scores, vos = [], []
        for h in range(nH):
            idx = l * nH + h
            qh = jnp.dot(x, wq_ref[idx], preferred_element_type=jnp.float32) + bq_ref[idx]
            kh = jnp.dot(x, wk_ref[idx], preferred_element_type=jnp.float32) + bk_ref[idx]
            vos.append(jnp.dot(x, wvo_ref[idx], preferred_element_type=jnp.float32))
            scores.append(
                lax.dot_general(qh, kh, (((1,), (1,)), ((), ())),
                                preferred_element_type=jnp.float32) + neg)

        # Merged softmax over all heads (score blocks stacked along sublanes).
        s_all = jnp.concatenate(scores, axis=0)                  # (nH*M, M)
        s_all = s_all - jnp.max(s_all, axis=-1, keepdims=True)
        p_all = jnp.exp(s_all)
        p_all = p_all / jnp.sum(p_all, axis=-1, keepdims=True)   # exact divide

        ctx = None
        for h in range(nH):
            c = jnp.dot(p_all[h * M:(h + 1) * M, :], vos[h],
                        preferred_element_type=jnp.float32)
            ctx = c if ctx is None else ctx + c
        attn_out = ctx + vl[0:1, :]                              # + (bv @ Wo + bo)
        x = _layernorm(x + attn_out, vl[1:2, :], vl[2:3, :])

        # ---- feed-forward ----------------------------------------------------
        h1 = _gelu(jnp.dot(x, w1_ref[l], preferred_element_type=jnp.float32)
                   + b1_ref[l])
        ffn = jnp.dot(h1, w2_ref[l], preferred_element_type=jnp.float32) + vl[3:4, :]
        x = _layernorm(x + ffn, vl[4:5, :], vl[5:6, :])

    # ---- token classifier: single lane-dense (M, 128) write -----------------
    out_ref[...] = (jnp.dot(x, wc_ref[...], preferred_element_type=jnp.float32)
                    + bc_ref[...]).astype(out_ref.dtype)


# ---------------------------------------------------------------------------
# Small BERT-for-token-classification (deterministic synthetic weights)
# ---------------------------------------------------------------------------
CFG = dict(vocab=100, hidden=32, heads=4, layers=2, intermediate=64,
           max_pos=64, type_vocab=2, num_labels=9)


def init_params(key, cfg):
    def normal(k, shape):
        return 0.02 * jax.random.normal(k, shape, dtype=jnp.float32)

    H, I, L = cfg["hidden"], cfg["intermediate"], cfg["num_labels"]
    keys = iter(jax.random.split(key, 8 + cfg["layers"] * 8))
    params = {
        "word_emb": normal(next(keys), (cfg["vocab"], H)),
        "pos_emb": normal(next(keys), (cfg["max_pos"], H)),
        "type_emb": normal(next(keys), (cfg["type_vocab"], H)),
        "emb_ln_g": jnp.ones((H,), jnp.float32),
        "emb_ln_b": jnp.zeros((H,), jnp.float32),
        "wc": normal(next(keys), (H, L)),
        "bc": jnp.zeros((L,), jnp.float32),
        "layers": [],
    }
    for _ in range(cfg["layers"]):
        layer = {
            "wq": normal(next(keys), (H, H)), "bq": jnp.zeros((H,), jnp.float32),
            "wk": normal(next(keys), (H, H)), "bk": jnp.zeros((H,), jnp.float32),
            "wv": normal(next(keys), (H, H)), "bv": jnp.zeros((H,), jnp.float32),
            "wo": normal(next(keys), (H, H)), "bo": jnp.zeros((H,), jnp.float32),
            "ln1_g": jnp.ones((H,), jnp.float32), "ln1_b": jnp.zeros((H,), jnp.float32),
            "w1": normal(next(keys), (H, I)), "b1": jnp.zeros((I,), jnp.float32),
            "w2": normal(next(keys), (I, H)), "b2": jnp.zeros((H,), jnp.float32),
            "ln2_g": jnp.ones((H,), jnp.float32), "ln2_b": jnp.zeros((H,), jnp.float32),
        }
        params["layers"].append(layer)
    return params


def pack_params(params, cfg):
    """One-time weight packing (kept OFF the per-call forward path)."""
    H, I, nH, L = cfg["hidden"], cfg["intermediate"], cfg["heads"], cfg["layers"]
    dh = H // nH
    nlab = cfg["num_labels"]
    scale = 1.0 / (dh ** 0.5)
    lyrs = params["layers"]

    # Per-head Q/K weight & bias slabs, with 1/sqrt(dh) folded into Q.
    wq = jnp.stack([lyr["wq"][:, h * dh:(h + 1) * dh] * scale
                    for lyr in lyrs for h in range(nH)])            # (L*nH, H, dh)
    bq = jnp.stack([(lyr["bq"][h * dh:(h + 1) * dh] * scale)[None, :]
                    for lyr in lyrs for h in range(nH)])            # (L*nH, 1, dh)
    wk = jnp.stack([lyr["wk"][:, h * dh:(h + 1) * dh]
                    for lyr in lyrs for h in range(nH)])            # (L*nH, H, dh)
    bk = jnp.stack([lyr["bk"][h * dh:(h + 1) * dh][None, :]
                    for lyr in lyrs for h in range(nH)])            # (L*nH, 1, dh)

    # Merged value * output projection: Wvo_h = Wv_h @ Wo_h, bvo = bv @ Wo + bo.
    wvo = jnp.stack([lyr["wv"][:, h * dh:(h + 1) * dh] @ lyr["wo"][h * dh:(h + 1) * dh, :]
                     for lyr in lyrs for h in range(nH)])           # (L*nH, H, H)
    bvo = [lyr["bv"] @ lyr["wo"] + lyr["bo"] for lyr in lyrs]       # L x (H,)

    # Per-layer H-wide vectors packed into one slab: rows =
    # [bvo, ln1_g, ln1_b, b2, ln2_g, ln2_b].
    vecs = jnp.stack([jnp.stack([bvo[i], lyr["ln1_g"], lyr["ln1_b"],
                                 lyr["b2"], lyr["ln2_g"], lyr["ln2_b"]])
                      for i, lyr in enumerate(lyrs)])               # (L, 6, H)

    w1 = jnp.stack([lyr["w1"] for lyr in lyrs])                     # (L, H, I)
    b1 = jnp.stack([lyr["b1"][None, :] for lyr in lyrs])            # (L, 1, I)
    w2 = jnp.stack([lyr["w2"] for lyr in lyrs])                     # (L, I, H)

    # Lane-dense padded classifier (padded columns are exact zeros).
    wc_pad = jnp.zeros((H, LOGIT_PAD), jnp.float32).at[:, :nlab].set(params["wc"])
    bc_pad = jnp.zeros((1, LOGIT_PAD), jnp.float32).at[0, :nlab].set(params["bc"])

    embln = jnp.stack([params["emb_ln_g"], params["emb_ln_b"]])     # (2, H)

    return dict(word_emb=params["word_emb"], pos_emb=params["pos_emb"],
                type_emb=params["type_emb"], embln=embln,
                wq=wq, bq=bq, wk=wk, bk=bk, wvo=wvo,
                w1=w1, b1=b1, w2=w2, vecs=vecs,
                wc_pad=wc_pad, bc_pad=bc_pad)


def bert_token_classifier(packed, input_ids, cfg):
    B, S = input_ids.shape
    H, nH = cfg["hidden"], cfg["heads"]
    L = cfg["layers"]
    nlab = cfg["num_labels"]
    dh = H // nH
    M = B * S

    # Embeddings (gather is glue / plain JAX). token_type_ids = 0.
    emb = (jnp.take(packed["word_emb"], input_ids, axis=0)
           + packed["pos_emb"][:S][None, :, :]
           + packed["type_emb"][0][None, None, :]).reshape(M, H)

    vmem = pl.BlockSpec(memory_space=pltpu.MemorySpace.VMEM)
    logits_pad = pl.pallas_call(
        functools.partial(_bert_fused_kernel, S=S, L=L, nH=nH, dh=dh),
        out_shape=jax.ShapeDtypeStruct((M, LOGIT_PAD), jnp.float32),
        in_specs=[vmem] * 13,
        out_specs=vmem,
    )(emb, packed["embln"],
      packed["wq"], packed["bq"], packed["wk"], packed["bk"], packed["wvo"],
      packed["w1"], packed["b1"], packed["w2"], packed["vecs"],
      packed["wc_pad"], packed["bc_pad"])

    return logits_pad[:, :nlab].reshape(B, S, nlab)


# ---------------------------------------------------------------------------
if __name__ == "__main__":
    key = jax.random.PRNGKey(0)
    pkey, ikey = jax.random.split(key)
    params = init_params(pkey, CFG)
    packed = pack_params(params, CFG)       # one-time packing, off the per-call path

    B, S = 2, 8
    input_ids = jax.random.randint(ikey, (B, S), 0, CFG["vocab"], dtype=jnp.int32)

    fwd = jax.jit(functools.partial(bert_token_classifier, cfg=CFG))
    logits = fwd(packed, input_ids)
    jax.block_until_ready(logits)

    assert logits.shape == (B, S, CFG["num_labels"])
    assert logits.dtype == jnp.float32
    print("KERNEL_OK")
</pallas_src>

<mosaic_0001>
module attributes {stable_mosaic.version = 11 : i64} {
  func.func @_bert_fused_kernel(%arg0: memref<16x32xf32, #tpu.memory_space<vmem>>, %arg1: memref<2x32xf32, #tpu.memory_space<vmem>>, %arg2: memref<8x32x8xf32, #tpu.memory_space<vmem>>, %arg3: memref<8x1x8xf32, #tpu.memory_space<vmem>>, %arg4: memref<8x32x8xf32, #tpu.memory_space<vmem>>, %arg5: memref<8x1x8xf32, #tpu.memory_space<vmem>>, %arg6: memref<8x32x32xf32, #tpu.memory_space<vmem>>, %arg7: memref<2x32x64xf32, #tpu.memory_space<vmem>>, %arg8: memref<2x1x64xf32, #tpu.memory_space<vmem>>, %arg9: memref<2x64x32xf32, #tpu.memory_space<vmem>>, %arg10: memref<2x6x32xf32, #tpu.memory_space<vmem>>, %arg11: memref<32x128xf32, #tpu.memory_space<vmem>>, %arg12: memref<1x128xf32, #tpu.memory_space<vmem>>, %arg13: memref<16x128xf32, #tpu.memory_space<vmem>>) attributes {dimension_semantics = [], scalar_prefetch = 0 : i64, scratch_operands = 0 : i64, tpu.core_type = #tpu.core_type<tc>} {
    %c0 = arith.constant 0 : index
    %c0_0 = arith.constant 0 : index
    %0 = vector.load %arg1[%c0, %c0_0] : memref<2x32xf32, #tpu.memory_space<vmem>>, vector<2x32xf32>
    %c0_1 = arith.constant 0 : index
    %c0_2 = arith.constant 0 : index
    %1 = vector.load %arg0[%c0_1, %c0_2] : memref<16x32xf32, #tpu.memory_space<vmem>>, vector<16x32xf32>
    %2 = vector.extract_strided_slice %0 {offsets = [0, 0], sizes = [1, 32], strides = [1, 1]} : vector<2x32xf32> to vector<1x32xf32>
    %3 = vector.extract_strided_slice %0 {offsets = [1, 0], sizes = [1, 32], strides = [1, 1]} : vector<2x32xf32> to vector<1x32xf32>
    %cst = arith.constant dense<0.000000e+00> : vector<16xf32>
    %4 = vector.multi_reduction <add>, %1, %cst [1] : vector<16x32xf32> to vector<16xf32>
    %5 = vector.shape_cast %4 : vector<16xf32> to vector<16x1xf32>
    %cst_3 = arith.constant 3.200000e+01 : f32
    %6 = vector.broadcast %cst_3 : f32 to vector<16x1xf32>
    %7 = arith.divf %5, %6 : vector<16x1xf32>
    %8 = vector.broadcast %7 : vector<16x1xf32> to vector<16x32xf32>
    %9 = arith.subf %1, %8 : vector<16x32xf32>
    %10 = arith.mulf %9, %9 : vector<16x32xf32>
    %cst_4 = arith.constant dense<0.000000e+00> : vector<16xf32>
    %11 = vector.multi_reduction <add>, %10, %cst_4 [1] : vector<16x32xf32> to vector<16xf32>
    %12 = vector.shape_cast %11 : vector<16xf32> to vector<16x1xf32>
    %cst_5 = arith.constant 3.200000e+01 : f32
    %13 = vector.broadcast %cst_5 : f32 to vector<16x1xf32>
    %14 = arith.divf %12, %13 : vector<16x1xf32>
    %15 = vector.broadcast %7 : vector<16x1xf32> to vector<16x32xf32>
    %16 = arith.subf %1, %15 : vector<16x32xf32>
    %cst_6 = arith.constant 9.99999996E-13 : f32
    %17 = vector.broadcast %cst_6 : f32 to vector<16x1xf32>
    %18 = arith.addf %14, %17 : vector<16x1xf32>
    %19 = math.rsqrt %18 : vector<16x1xf32>
    %20 = vector.broadcast %19 : vector<16x1xf32> to vector<16x32xf32>
    %21 = arith.mulf %16, %20 : vector<16x32xf32>
    %22 = vector.broadcast %2 : vector<1x32xf32> to vector<16x32xf32>
    %23 = arith.mulf %21, %22 : vector<16x32xf32>
    %24 = vector.broadcast %3 : vector<1x32xf32> to vector<16x32xf32>
    %25 = arith.addf %23, %24 : vector<16x32xf32>
    %26 = tpu.iota {dimensions = array<i32: 0>} : vector<16x16xi32>
    %c3_i32 = arith.constant 3 : i32
    %27 = vector.broadcast %c3_i32 : i32 to vector<16x16xi32>
    %28 = arith.shrsi %26, %27 : vector<16x16xi32>
    %29 = tpu.iota {dimensions = array<i32: 1>} : vector<16x16xi32>
    %c3_i32_7 = arith.constant 3 : i32
    %30 = vector.broadcast %c3_i32_7 : i32 to vector<16x16xi32>
    %31 = arith.shrsi %29, %30 : vector<16x16xi32>
    %32 = arith.cmpi eq, %28, %31 : vector<16x16xi32>
    %cst_8 = arith.constant 0.000000e+00 : f32
    %cst_9 = arith.constant -1.000000e+30 : f32
    %33 = vector.broadcast %cst_8 : f32 to vector<16x16xf32>
    %34 = vector.broadcast %cst_9 : f32 to vector<16x16xf32>
    %35 = arith.select %32, %33, %34 : vector<16x16xi1>, vector<16x16xf32>
    %c0_10 = arith.constant 0 : index
    %c0_11 = arith.constant 0 : index
    %c0_12 = arith.constant 0 : index
    %36 = vector.load %arg10[%c0_10, %c0_11, %c0_12] : memref<2x6x32xf32, #tpu.memory_space<vmem>>, vector<1x6x32xf32>
    %37 = vector.shape_cast %36 : vector<1x6x32xf32> to vector<6x32xf32>
    %c0_13 = arith.constant 0 : index
    %c0_14 = arith.constant 0 : index
    %c0_15 = arith.constant 0 : index
    %38 = vector.load %arg2[%c0_13, %c0_14, %c0_15] : memref<8x32x8xf32, #tpu.memory_space<vmem>>, vector<1x32x8xf32>
    %39 = vector.shape_cast %38 : vector<1x32x8xf32> to vector<32x8xf32>
    %cst_16 = arith.constant dense<0.000000e+00> : vector<16x8xf32>
    %40 = tpu.matmul %25, %39, %cst_16 {dimension_numbers = #tpu.dot_dimension_numbers<[1], [0], [0], [1], [0, 0, 1, 1], [], []>} : vector<16x32xf32>, vector<32x8xf32>, vector<16x8xf32> -> vector<16x8xf32>
    %c0_17 = arith.constant 0 : index
    %c0_18 = arith.constant 0 : index
    %c0_19 = arith.constant 0 : index
    %41 = vector.load %arg3[%c0_17, %c0_18, %c0_19] : memref<8x1x8xf32, #tpu.memory_space<vmem>>, vector<1x1x8xf32>
    %42 = vector.shape_cast %41 : vector<1x1x8xf32> to vector<1x8xf32>
    %43 = vector.broadcast %42 : vector<1x8xf32> to vector<16x8xf32>
    %44 = arith.addf %40, %43 : vector<16x8xf32>
    %c0_20 = arith.constant 0 : index
    %c0_21 = arith.constant 0 : index
    %c0_22 = arith.constant 0 : index
    %45 = vector.load %arg4[%c0_20, %c0_21, %c0_22] : memref<8x32x8xf32, #tpu.memory_space<vmem>>, vector<1x32x8xf32>
    %46 = vector.shape_cast %45 : vector<1x32x8xf32> to vector<32x8xf32>
    %cst_23 = arith.constant dense<0.000000e+00> : vector<16x8xf32>
    %47 = tpu.matmul %25, %46, %cst_23 {dimension_numbers = #tpu.dot_dimension_numbers<[1], [0], [0], [1], [0, 0, 1, 1], [], []>} : vector<16x32xf32>, vector<32x8xf32>, vector<16x8xf32> -> vector<16x8xf32>
    %c0_24 = arith.constant 0 : index
    %c0_25 = arith.constant 0 : index
    %c0_26 = arith.constant 0 : index
    %48 = vector.load %arg5[%c0_24, %c0_25, %c0_26] : memref<8x1x8xf32, #tpu.memory_space<vmem>>, vector<1x1x8xf32>
    %49 = vector.shape_cast %48 : vector<1x1x8xf32> to vector<1x8xf32>
    %50 = vector.broadcast %49 : vector<1x8xf32> to vector<16x8xf32>
    %51 = arith.addf %47, %50 : vector<16x8xf32>
    %c0_27 = arith.constant 0 : index
    %c0_28 = arith.constant 0 : index
    %c0_29 = arith.constant 0 : index
    %52 = vector.load %arg6[%c0_27, %c0_28, %c0_29] : memref<8x32x32xf32, #tpu.memory_space<vmem>>, vector<1x32x32xf32>
    %53 = vector.shape_cast %52 : vector<1x32x32xf32> to vector<32x32xf32>
    %cst_30 = arith.constant dense<0.000000e+00> : vector<16x32xf32>
    %54 = tpu.matmul %25, %53, %cst_30 {dimension_numbers = #tpu.dot_dimension_numbers<[1], [0], [0], [1], [0, 0, 1, 1], [], []>} : vector<16x32xf32>, vector<32x32xf32>, vector<16x32xf32> -> vector<16x32xf32>
    %cst_31 = arith.constant dense<0.000000e+00> : vector<16x16xf32>
    %55 = tpu.matmul %44, %51, %cst_31 {dimension_numbers = #tpu.dot_dimension_numbers<[1], [1], [0], [0], [0, 0, 1, 0], [], []>} : vector<16x8xf32>, vector<16x8xf32>, vector<16x16xf32> -> vector<16x16xf32>
    %56 = arith.addf %55, %35 : vector<16x16xf32>
    %c1 = arith.constant 1 : index
    %c0_32 = arith.constant 0 : index
    %c0_33 = arith.constant 0 : index
    %57 = vector.load %arg2[%c1, %c0_32, %c0_33] : memref<8x32x8xf32, #tpu.memory_space<vmem>>, vector<1x32x8xf32>
    %58 = vector.shape_cast %57 : vector<1x32x8xf32> to vector<32x8xf32>
    %cst_34 = arith.constant dense<0.000000e+00> : vector<16x8xf32>
    %59 = tpu.matmul %25, %58, %cst_34 {dimension_numbers = #tpu.dot_dimension_numbers<[1], [0], [0], [1], [0, 0, 1, 1], [], []>} : vector<16x32xf32>, vector<32x8xf32>, vector<16x8xf32> -> vector<16x8xf32>
    %c1_35 = arith.constant 1 : index
    %c0_36 = arith.constant 0 : index
    %c0_37 = arith.constant 0 : index
    %60 = vector.load %arg3[%c1_35, %c0_36, %c0_37] : memref<8x1x8xf32, #tpu.memory_space<vmem>>, vector<1x1x8xf32>
    %61 = vector.shape_cast %60 : vector<1x1x8xf32> to vector<1x8xf32>
    %62 = vector.broadcast %61 : vector<1x8xf32> to vector<16x8xf32>
    %63 = arith.addf %59, %62 : vector<16x8xf32>
    %c1_38 = arith.constant 1 : index
    %c0_39 = arith.constant 0 : index
    %c0_40 = arith.constant 0 : index
    %64 = vector.load %arg4[%c1_38, %c0_39, %c0_40] : memref<8x32x8xf32, #tpu.memory_space<vmem>>, vector<1x32x8xf32>
    %65 = vector.shape_cast %64 : vector<1x32x8xf32> to vector<32x8xf32>
    %cst_41 = arith.constant dense<0.000000e+00> : vector<16x8xf32>
    %66 = tpu.matmul %25, %65, %cst_41 {dimension_numbers = #tpu.dot_dimension_numbers<[1], [0], [0], [1], [0, 0, 1, 1], [], []>} : vector<16x32xf32>, vector<32x8xf32>, vector<16x8xf32> -> vector<16x8xf32>
    %c1_42 = arith.constant 1 : index
    %c0_43 = arith.constant 0 : index
    %c0_44 = arith.constant 0 : index
    %67 = vector.load %arg5[%c1_42, %c0_43, %c0_44] : memref<8x1x8xf32, #tpu.memory_space<vmem>>, vector<1x1x8xf32>
    %68 = vector.shape_cast %67 : vector<1x1x8xf32> to vector<1x8xf32>
    %69 = vector.broadcast %68 : vector<1x8xf32> to vector<16x8xf32>
    %70 = arith.addf %66, %69 : vector<16x8xf32>
    %c1_45 = arith.constant 1 : index
    %c0_46 = arith.constant 0 : index
    %c0_47 = arith.constant 0 : index
    %71 = vector.load %arg6[%c1_45, %c0_46, %c0_47] : memref<8x32x32xf32, #tpu.memory_space<vmem>>, vector<1x32x32xf32>
    %72 = vector.shape_cast %71 : vector<1x32x32xf32> to vector<32x32xf32>
    %cst_48 = arith.constant dense<0.000000e+00> : vector<16x32xf32>
    %73 = tpu.matmul %25, %72, %cst_48 {dimension_numbers = #tpu.dot_dimension_numbers<[1], [0], [0], [1], [0, 0, 1, 1], [], []>} : vector<16x32xf32>, vector<32x32xf32>, vector<16x32xf32> -> vector<16x32xf32>
    %cst_49 = arith.constant dense<0.000000e+00> : vector<16x16xf32>
    %74 = tpu.matmul %63, %70, %cst_49 {dimension_numbers = #tpu.dot_dimension_numbers<[1], [1], [0], [0], [0, 0, 1, 0], [], []>} : vector<16x8xf32>, vector<16x8xf32>, vector<16x16xf32> -> vector<16x16xf32>
    %75 = arith.addf %74, %35 : vector<16x16xf32>
    %c2 = arith.constant 2 : index
    %c0_50 = arith.constant 0 : index
    %c0_51 = arith.constant 0 : index
    %76 = vector.load %arg2[%c2, %c0_50, %c0_51] : memref<8x32x8xf32, #tpu.memory_space<vmem>>, vector<1x32x8xf32>
    %77 = vector.shape_cast %76 : vector<1x32x8xf32> to vector<32x8xf32>
    %cst_52 = arith.constant dense<0.000000e+00> : vector<16x8xf32>
    %78 = tpu.matmul %25, %77, %cst_52 {dimension_numbers = #tpu.dot_dimension_numbers<[1], [0], [0], [1], [0, 0, 1, 1], [], []>} : vector<16x32xf32>, vector<32x8xf32>, vector<16x8xf32> -> vector<16x8xf32>
    %c2_53 = arith.constant 2 : index
    %c0_54 = arith.constant 0 : index
    %c0_55 = arith.constant 0 : index
    %79 = vector.load %arg3[%c2_53, %c0_54, %c0_55] : memref<8x1x8xf32, #tpu.memory_space<vmem>>, vector<1x1x8xf32>
    %80 = vector.shape_cast %79 : vector<1x1x8xf32> to vector<1x8xf32>
    %81 = vector.broadcast %80 : vector<1x8xf32> to vector<16x8xf32>
    %82 = arith.addf %78, %81 : vector<16x8xf32>
    %c2_56 = arith.constant 2 : index
    %c0_57 = arith.constant 0 : index
    %c0_58 = arith.constant 0 : index
    %83 = vector.load %arg4[%c2_56, %c0_57, %c0_58] : memref<8x32x8xf32, #tpu.memory_space<vmem>>, vector<1x32x8xf32>
    %84 = vector.shape_cast %83 : vector<1x32x8xf32> to vector<32x8xf32>
    %cst_59 = arith.constant dense<0.000000e+00> : vector<16x8xf32>
    %85 = tpu.matmul %25, %84, %cst_59 {dimension_numbers = #tpu.dot_dimension_numbers<[1], [0], [0], [1], [0, 0, 1, 1], [], []>} : vector<16x32xf32>, vector<32x8xf32>, vector<16x8xf32> -> vector<16x8xf32>
    %c2_60 = arith.constant 2 : index
    %c0_61 = arith.constant 0 : index
    %c0_62 = arith.constant 0 : index
    %86 = vector.load %arg5[%c2_60, %c0_61, %c0_62] : memref<8x1x8xf32, #tpu.memory_space<vmem>>, vector<1x1x8xf32>
    %87 = vector.shape_cast %86 : vector<1x1x8xf32> to vector<1x8xf32>
    %88 = vector.broadcast %87 : vector<1x8xf32> to vector<16x8xf32>
    %89 = arith.addf %85, %88 : vector<16x8xf32>
    %c2_63 = arith.constant 2 : index
    %c0_64 = arith.constant 0 : index
    %c0_65 = arith.constant 0 : index
    %90 = vector.load %arg6[%c2_63, %c0_64, %c0_65] : memref<8x32x32xf32, #tpu.memory_space<vmem>>, vector<1x32x32xf32>
    %91 = vector.shape_cast %90 : vector<1x32x32xf32> to vector<32x32xf32>
    %cst_66 = arith.constant dense<0.000000e+00> : vector<16x32xf32>
    %92 = tpu.matmul %25, %91, %cst_66 {dimension_numbers = #tpu.dot_dimension_numbers<[1], [0], [0], [1], [0, 0, 1, 1], [], []>} : vector<16x32xf32>, vector<32x32xf32>, vector<16x32xf32> -> vector<16x32xf32>
    %cst_67 = arith.constant dense<0.000000e+00> : vector<16x16xf32>
    %93 = tpu.matmul %82, %89, %cst_67 {dimension_numbers = #tpu.dot_dimension_numbers<[1], [1], [0], [0], [0, 0, 1, 0], [], []>} : vector<16x8xf32>, vector<16x8xf32>, vector<16x16xf32> -> vector<16x16xf32>
    %94 = arith.addf %93, %35 : vector<16x16xf32>
    %c3 = arith.constant 3 : index
    %c0_68 = arith.constant 0 : index
    %c0_69 = arith.constant 0 : index
    %95 = vector.load %arg2[%c3, %c0_68, %c0_69] : memref<8x32x8xf32, #tpu.memory_space<vmem>>, vector<1x32x8xf32>
    %96 = vector.shape_cast %95 : vector<1x32x8xf32> to vector<32x8xf32>
    %cst_70 = arith.constant dense<0.000000e+00> : vector<16x8xf32>
    %97 = tpu.matmul %25, %96, %cst_70 {dimension_numbers = #tpu.dot_dimension_numbers<[1], [0], [0], [1], [0, 0, 1, 1], [], []>} : vector<16x32xf32>, vector<32x8xf32>, vector<16x8xf32> -> vector<16x8xf32>
    %c3_71 = arith.constant 3 : index
    %c0_72 = arith.constant 0 : index
    %c0_73 = arith.constant 0 : index
    %98 = vector.load %arg3[%c3_71, %c0_72, %c0_73] : memref<8x1x8xf32, #tpu.memory_space<vmem>>, vector<1x1x8xf32>
    %99 = vector.shape_cast %98 : vector<1x1x8xf32> to vector<1x8xf32>
    %100 = vector.broadcast %99 : vector<1x8xf32> to vector<16x8xf32>
    %101 = arith.addf %97, %100 : vector<16x8xf32>
    %c3_74 = arith.constant 3 : index
    %c0_75 = arith.constant 0 : index
    %c0_76 = arith.constant 0 : index
    %102 = vector.load %arg4[%c3_74, %c0_75, %c0_76] : memref<8x32x8xf32, #tpu.memory_space<vmem>>, vector<1x32x8xf32>
    %103 = vector.shape_cast %102 : vector<1x32x8xf32> to vector<32x8xf32>
    %cst_77 = arith.constant dense<0.000000e+00> : vector<16x8xf32>
    %104 = tpu.matmul %25, %103, %cst_77 {dimension_numbers = #tpu.dot_dimension_numbers<[1], [0], [0], [1], [0, 0, 1, 1], [], []>} : vector<16x32xf32>, vector<32x8xf32>, vector<16x8xf32> -> vector<16x8xf32>
    %c3_78 = arith.constant 3 : index
    %c0_79 = arith.constant 0 : index
    %c0_80 = arith.constant 0 : index
    %105 = vector.load %arg5[%c3_78, %c0_79, %c0_80] : memref<8x1x8xf32, #tpu.memory_space<vmem>>, vector<1x1x8xf32>
    %106 = vector.shape_cast %105 : vector<1x1x8xf32> to vector<1x8xf32>
    %107 = vector.broadcast %106 : vector<1x8xf32> to vector<16x8xf32>
    %108 = arith.addf %104, %107 : vector<16x8xf32>
    %c3_81 = arith.constant 3 : index
    %c0_82 = arith.constant 0 : index
    %c0_83 = arith.constant 0 : index
    %109 = vector.load %arg6[%c3_81, %c0_82, %c0_83] : memref<8x32x32xf32, #tpu.memory_space<vmem>>, vector<1x32x32xf32>
    %110 = vector.shape_cast %109 : vector<1x32x32xf32> to vector<32x32xf32>
    %cst_84 = arith.constant dense<0.000000e+00> : vector<16x32xf32>
    %111 = tpu.matmul %25, %110, %cst_84 {dimension_numbers = #tpu.dot_dimension_numbers<[1], [0], [0], [1], [0, 0, 1, 1], [], []>} : vector<16x32xf32>, vector<32x32xf32>, vector<16x32xf32> -> vector<16x32xf32>
    %cst_85 = arith.constant dense<0.000000e+00> : vector<16x16xf32>
    %112 = tpu.matmul %101, %108, %cst_85 {dimension_numbers = #tpu.dot_dimension_numbers<[1], [1], [0], [0], [0, 0, 1, 0], [], []>} : vector<16x8xf32>, vector<16x8xf32>, vector<16x16xf32> -> vector<16x16xf32>
    %113 = arith.addf %112, %35 : vector<16x16xf32>
    %114 = tpu.concatenate %56, %75, %94, %113 in 0 : vector<16x16xf32>, vector<16x16xf32>, vector<16x16xf32>, vector<16x16xf32> -> vector<64x16xf32>
    %cst_86 = arith.constant dense<0xFF800000> : vector<64xf32>
    %115 = vector.multi_reduction <maximumf>, %114, %cst_86 [1] : vector<64x16xf32> to vector<64xf32>
    %116 = vector.shape_cast %115 : vector<64xf32> to vector<64x1xf32>
    %117 = vector.broadcast %116 : vector<64x1xf32> to vector<64x16xf32>
    %118 = arith.subf %114, %117 : vector<64x16xf32>
    %119 = math.exp %118 : vector<64x16xf32>
    %cst_87 = arith.constant dense<0.000000e+00> : vector<64xf32>
    %120 = vector.multi_reduction <add>, %119, %cst_87 [1] : vector<64x16xf32> to vector<64xf32>
    %121 = vector.shape_cast %120 : vector<64xf32> to vector<64x1xf32>
    %122 = vector.broadcast %121 : vector<64x1xf32> to vector<64x16xf32>
    %123 = arith.divf %119, %122 : vector<64x16xf32>
    %124 = vector.extract_strided_slice %123 {offsets = [0, 0], sizes = [16, 16], strides = [1, 1]} : vector<64x16xf32> to vector<16x16xf32>
    %cst_88 = arith.constant dense<0.000000e+00> : vector<16x32xf32>
    %125 = tpu.matmul %124, %54, %cst_88 {dimension_numbers = #tpu.dot_dimension_numbers<[1], [0], [0], [1], [0, 0, 1, 1], [], []>} : vector<16x16xf32>, vector<16x32xf32>, vector<16x32xf32> -> vector<16x32xf32>
    %126 = vector.extract_strided_slice %123 {offsets = [16, 0], sizes = [16, 16], strides = [1, 1]} : vector<64x16xf32> to vector<16x16xf32>
    %cst_89 = arith.constant dense<0.000000e+00> : vector<16x32xf32>
    %127 = tpu.matmul %126, %73, %cst_89 {dimension_numbers = #tpu.dot_dimension_numbers<[1], [0], [0], [1], [0, 0, 1, 1], [], []>} : vector<16x16xf32>, vector<16x32xf32>, vector<16x32xf32> -> vector<16x32xf32>
    %128 = arith.addf %125, %127 : vector<16x32xf32>
    %129 = vector.extract_strided_slice %123 {offsets = [32, 0], sizes = [16, 16], strides = [1, 1]} : vector<64x16xf32> to vector<16x16xf32>
    %cst_90 = arith.constant dense<0.000000e+00> : vector<16x32xf32>
    %130 = tpu.matmul %129, %92, %cst_90 {dimension_numbers = #tpu.dot_dimension_numbers<[1], [0], [0], [1], [0, 0, 1, 1], [], []>} : vector<16x16xf32>, vector<16x32xf32>, vector<16x32xf32> -> vector<16x32xf32>
    %131 = arith.addf %128, %130 : vector<16x32xf32>
    %132 = vector.extract_strided_slice %123 {offsets = [48, 0], sizes = [16, 16], strides = [1, 1]} : vector<64x16xf32> to vector<16x16xf32>
    %cst_91 = arith.constant dense<0.000000e+00> : vector<16x32xf32>
    %133 = tpu.matmul %132, %111, %cst_91 {dimension_numbers = #tpu.dot_dimension_numbers<[1], [0], [0], [1], [0, 0, 1, 1], [], []>} : vector<16x16xf32>, vector<16x32xf32>, vector<16x32xf32> -> vector<16x32xf32>
    %134 = arith.addf %131, %133 : vector<16x32xf32>
    %135 = vector.extract_strided_slice %37 {offsets = [0, 0], sizes = [1, 32], strides = [1, 1]} : vector<6x32xf32> to vector<1x32xf32>
    %136 = vector.broadcast %135 : vector<1x32xf32> to vector<16x32xf32>
    %137 = arith.addf %134, %136 : vector<16x32xf32>
    %138 = arith.addf %25, %137 : vector<16x32xf32>
    %139 = vector.extract_strided_slice %37 {offsets = [1, 0], sizes = [1, 32], strides = [1, 1]} : vector<6x32xf32> to vector<1x32xf32>
    %140 = vector.extract_strided_slice %37 {offsets = [2, 0], sizes = [1, 32], strides = [1, 1]} : vector<6x32xf32> to vector<1x32xf32>
    %cst_92 = arith.constant dense<0.000000e+00> : vector<16xf32>
    %141 = vector.multi_reduction <add>, %138, %cst_92 [1] : vector<16x32xf32> to vector<16xf32>
    %142 = vector.shape_cast %141 : vector<16xf32> to vector<16x1xf32>
    %cst_93 = arith.constant 3.200000e+01 : f32
    %143 = vector.broadcast %cst_93 : f32 to vector<16x1xf32>
    %144 = arith.divf %142, %143 : vector<16x1xf32>
    %145 = vector.broadcast %144 : vector<16x1xf32> to vector<16x32xf32>
    %146 = arith.subf %138, %145 : vector<16x32xf32>
    %147 = arith.mulf %146, %146 : vector<16x32xf32>
    %cst_94 = arith.constant dense<0.000000e+00> : vector<16xf32>
    %148 = vector.multi_reduction <add>, %147, %cst_94 [1] : vector<16x32xf32> to vector<16xf32>
    %149 = vector.shape_cast %148 : vector<16xf32> to vector<16x1xf32>
    %cst_95 = arith.constant 3.200000e+01 : f32
    %150 = vector.broadcast %cst_95 : f32 to vector<16x1xf32>
    %151 = arith.divf %149, %150 : vector<16x1xf32>
    %152 = vector.broadcast %144 : vector<16x1xf32> to vector<16x32xf32>
    %153 = arith.subf %138, %152 : vector<16x32xf32>
    %cst_96 = arith.constant 9.99999996E-13 : f32
    %154 = vector.broadcast %cst_96 : f32 to vector<16x1xf32>
    %155 = arith.addf %151, %154 : vector<16x1xf32>
    %156 = math.rsqrt %155 : vector<16x1xf32>
    %157 = vector.broadcast %156 : vector<16x1xf32> to vector<16x32xf32>
    %158 = arith.mulf %153, %157 : vector<16x32xf32>
    %159 = vector.broadcast %139 : vector<1x32xf32> to vector<16x32xf32>
    %160 = arith.mulf %158, %159 : vector<16x32xf32>
    %161 = vector.broadcast %140 : vector<1x32xf32> to vector<16x32xf32>
    %162 = arith.addf %160, %161 : vector<16x32xf32>
    %c0_97 = arith.constant 0 : index
    %c0_98 = arith.constant 0 : index
    %c0_99 = arith.constant 0 : index
    %163 = vector.load %arg7[%c0_97, %c0_98, %c0_99] : memref<2x32x64xf32, #tpu.memory_space<vmem>>, vector<1x32x64xf32>
    %164 = vector.shape_cast %163 : vector<1x32x64xf32> to vector<32x64xf32>
    %cst_100 = arith.constant dense<0.000000e+00> : vector<16x64xf32>
    %165 = tpu.matmul %162, %164, %cst_100 {dimension_numbers = #tpu.dot_dimension_numbers<[1], [0], [0], [1], [0, 0, 1, 1], [], []>} : vector<16x32xf32>, vector<32x64xf32>, vector<16x64xf32> -> vector<16x64xf32>
    %c0_101 = arith.constant 0 : index
    %c0_102 = arith.constant 0 : index
    %c0_103 = arith.constant 0 : index
    %166 = vector.load %arg8[%c0_101, %c0_102, %c0_103] : memref<2x1x64xf32, #tpu.memory_space<vmem>>, vector<1x1x64xf32>
    %167 = vector.shape_cast %166 : vector<1x1x64xf32> to vector<1x64xf32>
    %168 = vector.broadcast %167 : vector<1x64xf32> to vector<16x64xf32>
    %169 = arith.addf %165, %168 : vector<16x64xf32>
    %cst_104 = arith.constant 5.000000e-01 : f32
    %170 = vector.broadcast %cst_104 : f32 to vector<16x64xf32>
    %171 = arith.mulf %170, %169 : vector<16x64xf32>
    %cst_105 = arith.constant 4.471500e-02 : f32
    %172 = vector.broadcast %cst_105 : f32 to vector<16x64xf32>
    %173 = arith.mulf %172, %169 : vector<16x64xf32>
    %174 = arith.mulf %173, %169 : vector<16x64xf32>
    %175 = arith.mulf %174, %169 : vector<16x64xf32>
    %176 = arith.addf %169, %175 : vector<16x64xf32>
    %cst_106 = arith.constant 0.797884583 : f32
    %177 = vector.broadcast %cst_106 : f32 to vector<16x64xf32>
    %178 = arith.mulf %177, %176 : vector<16x64xf32>
    %179 = math.tanh %178 : vector<16x64xf32>
    %cst_107 = arith.constant 1.000000e+00 : f32
    %180 = vector.broadcast %cst_107 : f32 to vector<16x64xf32>
    %181 = arith.addf %180, %179 : vector<16x64xf32>
    %182 = arith.mulf %171, %181 : vector<16x64xf32>
    %c0_108 = arith.constant 0 : index
    %c0_109 = arith.constant 0 : index
    %c0_110 = arith.constant 0 : index
    %183 = vector.load %arg9[%c0_108, %c0_109, %c0_110] : memref<2x64x32xf32, #tpu.memory_space<vmem>>, vector<1x64x32xf32>
    %184 = vector.shape_cast %183 : vector<1x64x32xf32> to vector<64x32xf32>
    %cst_111 = arith.constant dense<0.000000e+00> : vector<16x32xf32>
    %185 = tpu.matmul %182, %184, %cst_111 {dimension_numbers = #tpu.dot_dimension_numbers<[1], [0], [0], [1], [0, 0, 1, 1], [], []>} : vector<16x64xf32>, vector<64x32xf32>, vector<16x32xf32> -> vector<16x32xf32>
    %186 = vector.extract_strided_slice %37 {offsets = [3, 0], sizes = [1, 32], strides = [1, 1]} : vector<6x32xf32> to vector<1x32xf32>
    %187 = vector.broadcast %186 : vector<1x32xf32> to vector<16x32xf32>
    %188 = arith.addf %185, %187 : vector<16x32xf32>
    %189 = arith.addf %162, %188 : vector<16x32xf32>
    %190 = vector.extract_strided_slice %37 {offsets = [4, 0], sizes = [1, 32], strides = [1, 1]} : vector<6x32xf32> to vector<1x32xf32>
    %191 = vector.extract_strided_slice %37 {offsets = [5, 0], sizes = [1, 32], strides = [1, 1]} : vector<6x32xf32> to vector<1x32xf32>
    %cst_112 = arith.constant dense<0.000000e+00> : vector<16xf32>
    %192 = vector.multi_reduction <add>, %189, %cst_112 [1] : vector<16x32xf32> to vector<16xf32>
    %193 = vector.shape_cast %192 : vector<16xf32> to vector<16x1xf32>
    %cst_113 = arith.constant 3.200000e+01 : f32
    %194 = vector.broadcast %cst_113 : f32 to vector<16x1xf32>
    %195 = arith.divf %193, %194 : vector<16x1xf32>
    %196 = vector.broadcast %195 : vector<16x1xf32> to vector<16x32xf32>
    %197 = arith.subf %189, %196 : vector<16x32xf32>
    %198 = arith.mulf %197, %197 : vector<16x32xf32>
    %cst_114 = arith.constant dense<0.000000e+00> : vector<16xf32>
    %199 = vector.multi_reduction <add>, %198, %cst_114 [1] : vector<16x32xf32> to vector<16xf32>
    %200 = vector.shape_cast %199 : vector<16xf32> to vector<16x1xf32>
    %cst_115 = arith.constant 3.200000e+01 : f32
    %201 = vector.broadcast %cst_115 : f32 to vector<16x1xf32>
    %202 = arith.divf %200, %201 : vector<16x1xf32>
    %203 = vector.broadcast %195 : vector<16x1xf32> to vector<16x32xf32>
    %204 = arith.subf %189, %203 : vector<16x32xf32>
    %cst_116 = arith.constant 9.99999996E-13 : f32
    %205 = vector.broadcast %cst_116 : f32 to vector<16x1xf32>
    %206 = arith.addf %202, %205 : vector<16x1xf32>
    %207 = math.rsqrt %206 : vector<16x1xf32>
    %208 = vector.broadcast %207 : vector<16x1xf32> to vector<16x32xf32>
    %209 = arith.mulf %204, %208 : vector<16x32xf32>
    %210 = vector.broadcast %190 : vector<1x32xf32> to vector<16x32xf32>
    %211 = arith.mulf %209, %210 : vector<16x32xf32>
    %212 = vector.broadcast %191 : vector<1x32xf32> to vector<16x32xf32>
    %213 = arith.addf %211, %212 : vector<16x32xf32>
    %c1_117 = arith.constant 1 : index
    %c0_118 = arith.constant 0 : index
    %c0_119 = arith.constant 0 : index
    %214 = vector.load %arg10[%c1_117, %c0_118, %c0_119] : memref<2x6x32xf32, #tpu.memory_space<vmem>>, vector<1x6x32xf32>
    %215 = vector.shape_cast %214 : vector<1x6x32xf32> to vector<6x32xf32>
    %c4 = arith.constant 4 : index
    %c0_120 = arith.constant 0 : index
    %c0_121 = arith.constant 0 : index
    %216 = vector.load %arg2[%c4, %c0_120, %c0_121] : memref<8x32x8xf32, #tpu.memory_space<vmem>>, vector<1x32x8xf32>
    %217 = vector.shape_cast %216 : vector<1x32x8xf32> to vector<32x8xf32>
    %cst_122 = arith.constant dense<0.000000e+00> : vector<16x8xf32>
    %218 = tpu.matmul %213, %217, %cst_122 {dimension_numbers = #tpu.dot_dimension_numbers<[1], [0], [0], [1], [0, 0, 1, 1], [], []>} : vector<16x32xf32>, vector<32x8xf32>, vector<16x8xf32> -> vector<16x8xf32>
    %c4_123 = arith.constant 4 : index
    %c0_124 = arith.constant 0 : index
    %c0_125 = arith.constant 0 : index
    %219 = vector.load %arg3[%c4_123, %c0_124, %c0_125] : memref<8x1x8xf32, #tpu.memory_space<vmem>>, vector<1x1x8xf32>
    %220 = vector.shape_cast %219 : vector<1x1x8xf32> to vector<1x8xf32>
    %221 = vector.broadcast %220 : vector<1x8xf32> to vector<16x8xf32>
    %222 = arith.addf %218, %221 : vector<16x8xf32>
    %c4_126 = arith.constant 4 : index
    %c0_127 = arith.constant 0 : index
    %c0_128 = arith.constant 0 : index
    %223 = vector.load %arg4[%c4_126, %c0_127, %c0_128] : memref<8x32x8xf32, #tpu.memory_space<vmem>>, vector<1x32x8xf32>
    %224 = vector.shape_cast %223 : vector<1x32x8xf32> to vector<32x8xf32>
    %cst_129 = arith.constant dense<0.000000e+00> : vector<16x8xf32>
    %225 = tpu.matmul %213, %224, %cst_129 {dimension_numbers = #tpu.dot_dimension_numbers<[1], [0], [0], [1], [0, 0, 1, 1], [], []>} : vector<16x32xf32>, vector<32x8xf32>, vector<16x8xf32> -> vector<16x8xf32>
    %c4_130 = arith.constant 4 : index
    %c0_131 = arith.constant 0 : index
    %c0_132 = arith.constant 0 : index
    %226 = vector.load %arg5[%c4_130, %c0_131, %c0_132] : memref<8x1x8xf32, #tpu.memory_space<vmem>>, vector<1x1x8xf32>
    %227 = vector.shape_cast %226 : vector<1x1x8xf32> to vector<1x8xf32>
    %228 = vector.broadcast %227 : vector<1x8xf32> to vector<16x8xf32>
    %229 = arith.addf %225, %228 : vector<16x8xf32>
    %c4_133 = arith.constant 4 : index
    %c0_134 = arith.constant 0 : index
    %c0_135 = arith.constant 0 : index
    %230 = vector.load %arg6[%c4_133, %c0_134, %c0_135] : memref<8x32x32xf32, #tpu.memory_space<vmem>>, vector<1x32x32xf32>
    %231 = vector.shape_cast %230 : vector<1x32x32xf32> to vector<32x32xf32>
    %cst_136 = arith.constant dense<0.000000e+00> : vector<16x32xf32>
    %232 = tpu.matmul %213, %231, %cst_136 {dimension_numbers = #tpu.dot_dimension_numbers<[1], [0], [0], [1], [0, 0, 1, 1], [], []>} : vector<16x32xf32>, vector<32x32xf32>, vector<16x32xf32> -> vector<16x32xf32>
    %cst_137 = arith.constant dense<0.000000e+00> : vector<16x16xf32>
    %233 = tpu.matmul %222, %229, %cst_137 {dimension_numbers = #tpu.dot_dimension_numbers<[1], [1], [0], [0], [0, 0, 1, 0], [], []>} : vector<16x8xf32>, vector<16x8xf32>, vector<16x16xf32> -> vector<16x16xf32>
    %234 = arith.addf %233, %35 : vector<16x16xf32>
    %c5 = arith.constant 5 : index
    %c0_138 = arith.constant 0 : index
    %c0_139 = arith.constant 0 : index
    %235 = vector.load %arg2[%c5, %c0_138, %c0_139] : memref<8x32x8xf32, #tpu.memory_space<vmem>>, vector<1x32x8xf32>
    %236 = vector.shape_cast %235 : vector<1x32x8xf32> to vector<32x8xf32>
    %cst_140 = arith.constant dense<0.000000e+00> : vector<16x8xf32>
    %237 = tpu.matmul %213, %236, %cst_140 {dimension_numbers = #tpu.dot_dimension_numbers<[1], [0], [0], [1], [0, 0, 1, 1], [], []>} : vector<16x32xf32>, vector<32x8xf32>, vector<16x8xf32> -> vector<16x8xf32>
    %c5_141 = arith.constant 5 : index
    %c0_142 = arith.constant 0 : index
    %c0_143 = arith.constant 0 : index
    %238 = vector.load %arg3[%c5_141, %c0_142, %c0_143] : memref<8x1x8xf32, #tpu.memory_space<vmem>>, vector<1x1x8xf32>
    %239 = vector.shape_cast %238 : vector<1x1x8xf32> to vector<1x8xf32>
    %240 = vector.broadcast %239 : vector<1x8xf32> to vector<16x8xf32>
    %241 = arith.addf %237, %240 : vector<16x8xf32>
    %c5_144 = arith.constant 5 : index
    %c0_145 = arith.constant 0 : index
    %c0_146 = arith.constant 0 : index
    %242 = vector.load %arg4[%c5_144, %c0_145, %c0_146] : memref<8x32x8xf32, #tpu.memory_space<vmem>>, vector<1x32x8xf32>
    %243 = vector.shape_cast %242 : vector<1x32x8xf32> to vector<32x8xf32>
    %cst_147 = arith.constant dense<0.000000e+00> : vector<16x8xf32>
    %244 = tpu.matmul %213, %243, %cst_147 {dimension_numbers = #tpu.dot_dimension_numbers<[1], [0], [0], [1], [0, 0, 1, 1], [], []>} : vector<16x32xf32>, vector<32x8xf32>, vector<16x8xf32> -> vector<16x8xf32>
    %c5_148 = arith.constant 5 : index
    %c0_149 = arith.constant 0 : index
    %c0_150 = arith.constant 0 : index
    %245 = vector.load %arg5[%c5_148, %c0_149, %c0_150] : memref<8x1x8xf32, #tpu.memory_space<vmem>>, vector<1x1x8xf32>
    %246 = vector.shape_cast %245 : vector<1x1x8xf32> to vector<1x8xf32>
    %247 = vector.broadcast %246 : vector<1x8xf32> to vector<16x8xf32>
    %248 = arith.addf %244, %247 : vector<16x8xf32>
    %c5_151 = arith.constant 5 : index
    %c0_152 = arith.constant 0 : index
    %c0_153 = arith.constant 0 : index
    %249 = vector.load %arg6[%c5_151, %c0_152, %c0_153] : memref<8x32x32xf32, #tpu.memory_space<vmem>>, vector<1x32x32xf32>
    %250 = vector.shape_cast %249 : vector<1x32x32xf32> to vector<32x32xf32>
    %cst_154 = arith.constant dense<0.000000e+00> : vector<16x32xf32>
    %251 = tpu.matmul %213, %250, %cst_154 {dimension_numbers = #tpu.dot_dimension_numbers<[1], [0], [0], [1], [0, 0, 1, 1], [], []>} : vector<16x32xf32>, vector<32x32xf32>, vector<16x32xf32> -> vector<16x32xf32>
    %cst_155 = arith.constant dense<0.000000e+00> : vector<16x16xf32>
    %252 = tpu.matmul %241, %248, %cst_155 {dimension_numbers = #tpu.dot_dimension_numbers<[1], [1], [0], [0], [0, 0, 1, 0], [], []>} : vector<16x8xf32>, vector<16x8xf32>, vector<16x16xf32> -> vector<16x16xf32>
    %253 = arith.addf %252, %35 : vector<16x16xf32>
    %c6 = arith.constant 6 : index
    %c0_156 = arith.constant 0 : index
    %c0_157 = arith.constant 0 : index
    %254 = vector.load %arg2[%c6, %c0_156, %c0_157] : memref<8x32x8xf32, #tpu.memory_space<vmem>>, vector<1x32x8xf32>
    %255 = vector.shape_cast %254 : vector<1x32x8xf32> to vector<32x8xf32>
    %cst_158 = arith.constant dense<0.000000e+00> : vector<16x8xf32>
    %256 = tpu.matmul %213, %255, %cst_158 {dimension_numbers = #tpu.dot_dimension_numbers<[1], [0], [0], [1], [0, 0, 1, 1], [], []>} : vector<16x32xf32>, vector<32x8xf32>, vector<16x8xf32> -> vector<16x8xf32>
    %c6_159 = arith.constant 6 : index
    %c0_160 = arith.constant 0 : index
    %c0_161 = arith.constant 0 : index
    %257 = vector.load %arg3[%c6_159, %c0_160, %c0_161] : memref<8x1x8xf32, #tpu.memory_space<vmem>>, vector<1x1x8xf32>
    %258 = vector.shape_cast %257 : vector<1x1x8xf32> to vector<1x8xf32>
    %259 = vector.broadcast %258 : vector<1x8xf32> to vector<16x8xf32>
    %260 = arith.addf %256, %259 : vector<16x8xf32>
    %c6_162 = arith.constant 6 : index
    %c0_163 = arith.constant 0 : index
    %c0_164 = arith.constant 0 : index
    %261 = vector.load %arg4[%c6_162, %c0_163, %c0_164] : memref<8x32x8xf32, #tpu.memory_space<vmem>>, vector<1x32x8xf32>
    %262 = vector.shape_cast %261 : vector<1x32x8xf32> to vector<32x8xf32>
    %cst_165 = arith.constant dense<0.000000e+00> : vector<16x8xf32>
    %263 = tpu.matmul %213, %262, %cst_165 {dimension_numbers = #tpu.dot_dimension_numbers<[1], [0], [0], [1], [0, 0, 1, 1], [], []>} : vector<16x32xf32>, vector<32x8xf32>, vector<16x8xf32> -> vector<16x8xf32>
    %c6_166 = arith.constant 6 : index
    %c0_167 = arith.constant 0 : index
    %c0_168 = arith.constant 0 : index
    %264 = vector.load %arg5[%c6_166, %c0_167, %c0_168] : memref<8x1x8xf32, #tpu.memory_space<vmem>>, vector<1x1x8xf32>
    %265 = vector.shape_cast %264 : vector<1x1x8xf32> to vector<1x8xf32>
    %266 = vector.broadcast %265 : vector<1x8xf32> to vector<16x8xf32>
    %267 = arith.addf %263, %266 : vector<16x8xf32>
    %c6_169 = arith.constant 6 : index
    %c0_170 = arith.constant 0 : index
    %c0_171 = arith.constant 0 : index
    %268 = vector.load %arg6[%c6_169, %c0_170, %c0_171] : memref<8x32x32xf32, #tpu.memory_space<vmem>>, vector<1x32x32xf32>
    %269 = vector.shape_cast %268 : vector<1x32x32xf32> to vector<32x32xf32>
    %cst_172 = arith.constant dense<0.000000e+00> : vector<16x32xf32>
    %270 = tpu.matmul %213, %269, %cst_172 {dimension_numbers = #tpu.dot_dimension_numbers<[1], [0], [0], [1], [0, 0, 1, 1], [], []>} : vector<16x32xf32>, vector<32x32xf32>, vector<16x32xf32> -> vector<16x32xf32>
    %cst_173 = arith.constant dense<0.000000e+00> : vector<16x16xf32>
    %271 = tpu.matmul %260, %267, %cst_173 {dimension_numbers = #tpu.dot_dimension_numbers<[1], [1], [0], [0], [0, 0, 1, 0], [], []>} : vector<16x8xf32>, vector<16x8xf32>, vector<16x16xf32> -> vector<16x16xf32>
    %272 = arith.addf %271, %35 : vector<16x16xf32>
    %c7 = arith.constant 7 : index
    %c0_174 = arith.constant 0 : index
    %c0_175 = arith.constant 0 : index
    %273 = vector.load %arg2[%c7, %c0_174, %c0_175] : memref<8x32x8xf32, #tpu.memory_space<vmem>>, vector<1x32x8xf32>
    %274 = vector.shape_cast %273 : vector<1x32x8xf32> to vector<32x8xf32>
    %cst_176 = arith.constant dense<0.000000e+00> : vector<16x8xf32>
    %275 = tpu.matmul %213, %274, %cst_176 {dimension_numbers = #tpu.dot_dimension_numbers<[1], [0], [0], [1], [0, 0, 1, 1], [], []>} : vector<16x32xf32>, vector<32x8xf32>, vector<16x8xf32> -> vector<16x8xf32>
    %c7_177 = arith.constant 7 : index
    %c0_178 = arith.constant 0 : index
    %c0_179 = arith.constant 0 : index
    %276 = vector.load %arg3[%c7_177, %c0_178, %c0_179] : memref<8x1x8xf32, #tpu.memory_space<vmem>>, vector<1x1x8xf32>
    %277 = vector.shape_cast %276 : vector<1x1x8xf32> to vector<1x8xf32>
    %278 = vector.broadcast %277 : vector<1x8xf32> to vector<16x8xf32>
    %279 = arith.addf %275, %278 : vector<16x8xf32>
    %c7_180 = arith.constant 7 : index
    %c0_181 = arith.constant 0 : index
    %c0_182 = arith.constant 0 : index
    %280 = vector.load %arg4[%c7_180, %c0_181, %c0_182] : memref<8x32x8xf32, #tpu.memory_space<vmem>>, vector<1x32x8xf32>
    %281 = vector.shape_cast %280 : vector<1x32x8xf32> to vector<32x8xf32>
    %cst_183 = arith.constant dense<0.000000e+00> : vector<16x8xf32>
    %282 = tpu.matmul %213, %281, %cst_183 {dimension_numbers = #tpu.dot_dimension_numbers<[1], [0], [0], [1], [0, 0, 1, 1], [], []>} : vector<16x32xf32>, vector<32x8xf32>, vector<16x8xf32> -> vector<16x8xf32>
    %c7_184 = arith.constant 7 : index
    %c0_185 = arith.constant 0 : index
    %c0_186 = arith.constant 0 : index
    %283 = vector.load %arg5[%c7_184, %c0_185, %c0_186] : memref<8x1x8xf32, #tpu.memory_space<vmem>>, vector<1x1x8xf32>
    %284 = vector.shape_cast %283 : vector<1x1x8xf32> to vector<1x8xf32>
    %285 = vector.broadcast %284 : vector<1x8xf32> to vector<16x8xf32>
    %286 = arith.addf %282, %285 : vector<16x8xf32>
    %c7_187 = arith.constant 7 : index
    %c0_188 = arith.constant 0 : index
    %c0_189 = arith.constant 0 : index
    %287 = vector.load %arg6[%c7_187, %c0_188, %c0_189] : memref<8x32x32xf32, #tpu.memory_space<vmem>>, vector<1x32x32xf32>
    %288 = vector.shape_cast %287 : vector<1x32x32xf32> to vector<32x32xf32>
    %cst_190 = arith.constant dense<0.000000e+00> : vector<16x32xf32>
    %289 = tpu.matmul %213, %288, %cst_190 {dimension_numbers = #tpu.dot_dimension_numbers<[1], [0], [0], [1], [0, 0, 1, 1], [], []>} : vector<16x32xf32>, vector<32x32xf32>, vector<16x32xf32> -> vector<16x32xf32>
    %cst_191 = arith.constant dense<0.000000e+00> : vector<16x16xf32>
    %290 = tpu.matmul %279, %286, %cst_191 {dimension_numbers = #tpu.dot_dimension_numbers<[1], [1], [0], [0], [0, 0, 1, 0], [], []>} : vector<16x8xf32>, vector<16x8xf32>, vector<16x16xf32> -> vector<16x16xf32>
    %291 = arith.addf %290, %35 : vector<16x16xf32>
    %292 = tpu.concatenate %234, %253, %272, %291 in 0 : vector<16x16xf32>, vector<16x16xf32>, vector<16x16xf32>, vector<16x16xf32> -> vector<64x16xf32>
    %cst_192 = arith.constant dense<0xFF800000> : vector<64xf32>
    %293 = vector.multi_reduction <maximumf>, %292, %cst_192 [1] : vector<64x16xf32> to vector<64xf32>
    %294 = vector.shape_cast %293 : vector<64xf32> to vector<64x1xf32>
    %295 = vector.broadcast %294 : vector<64x1xf32> to vector<64x16xf32>
    %296 = arith.subf %292, %295 : vector<64x16xf32>
    %297 = math.exp %296 : vector<64x16xf32>
    %cst_193 = arith.constant dense<0.000000e+00> : vector<64xf32>
    %298 = vector.multi_reduction <add>, %297, %cst_193 [1] : vector<64x16xf32> to vector<64xf32>
    %299 = vector.shape_cast %298 : vector<64xf32> to vector<64x1xf32>
    %300 = vector.broadcast %299 : vector<64x1xf32> to vector<64x16xf32>
    %301 = arith.divf %297, %300 : vector<64x16xf32>
    %302 = vector.extract_strided_slice %301 {offsets = [0, 0], sizes = [16, 16], strides = [1, 1]} : vector<64x16xf32> to vector<16x16xf32>
    %cst_194 = arith.constant dense<0.000000e+00> : vector<16x32xf32>
    %303 = tpu.matmul %302, %232, %cst_194 {dimension_numbers = #tpu.dot_dimension_numbers<[1], [0], [0], [1], [0, 0, 1, 1], [], []>} : vector<16x16xf32>, vector<16x32xf32>, vector<16x32xf32> -> vector<16x32xf32>
    %304 = vector.extract_strided_slice %301 {offsets = [16, 0], sizes = [16, 16], strides = [1, 1]} : vector<64x16xf32> to vector<16x16xf32>
    %cst_195 = arith.constant dense<0.000000e+00> : vector<16x32xf32>
    %305 = tpu.matmul %304, %251, %cst_195 {dimension_numbers = #tpu.dot_dimension_numbers<[1], [0], [0], [1], [0, 0, 1, 1], [], []>} : vector<16x16xf32>, vector<16x32xf32>, vector<16x32xf32> -> vector<16x32xf32>
    %306 = arith.addf %303, %305 : vector<16x32xf32>
    %307 = vector.extract_strided_slice %301 {offsets = [32, 0], sizes = [16, 16], strides = [1, 1]} : vector<64x16xf32> to vector<16x16xf32>
    %cst_196 = arith.constant dense<0.000000e+00> : vector<16x32xf32>
    %308 = tpu.matmul %307, %270, %cst_196 {dimension_numbers = #tpu.dot_dimension_numbers<[1], [0], [0], [1], [0, 0, 1, 1], [], []>} : vector<16x16xf32>, vector<16x32xf32>, vector<16x32xf32> -> vector<16x32xf32>
    %309 = arith.addf %306, %308 : vector<16x32xf32>
    %310 = vector.extract_strided_slice %301 {offsets = [48, 0], sizes = [16, 16], strides = [1, 1]} : vector<64x16xf32> to vector<16x16xf32>
    %cst_197 = arith.constant dense<0.000000e+00> : vector<16x32xf32>
    %311 = tpu.matmul %310, %289, %cst_197 {dimension_numbers = #tpu.dot_dimension_numbers<[1], [0], [0], [1], [0, 0, 1, 1], [], []>} : vector<16x16xf32>, vector<16x32xf32>, vector<16x32xf32> -> vector<16x32xf32>
    %312 = arith.addf %309, %311 : vector<16x32xf32>
    %313 = vector.extract_strided_slice %215 {offsets = [0, 0], sizes = [1, 32], strides = [1, 1]} : vector<6x32xf32> to vector<1x32xf32>
    %314 = vector.broadcast %313 : vector<1x32xf32> to vector<16x32xf32>
    %315 = arith.addf %312, %314 : vector<16x32xf32>
    %316 = arith.addf %213, %315 : vector<16x32xf32>
    %317 = vector.extract_strided_slice %215 {offsets = [1, 0], sizes = [1, 32], strides = [1, 1]} : vector<6x32xf32> to vector<1x32xf32>
    %318 = vector.extract_strided_slice %215 {offsets = [2, 0], sizes = [1, 32], strides = [1, 1]} : vector<6x32xf32> to vector<1x32xf32>
    %cst_198 = arith.constant dense<0.000000e+00> : vector<16xf32>
    %319 = vector.multi_reduction <add>, %316, %cst_198 [1] : vector<16x32xf32> to vector<16xf32>
    %320 = vector.shape_cast %319 : vector<16xf32> to vector<16x1xf32>
    %cst_199 = arith.constant 3.200000e+01 : f32
    %321 = vector.broadcast %cst_199 : f32 to vector<16x1xf32>
    %322 = arith.divf %320, %321 : vector<16x1xf32>
    %323 = vector.broadcast %322 : vector<16x1xf32> to vector<16x32xf32>
    %324 = arith.subf %316, %323 : vector<16x32xf32>
    %325 = arith.mulf %324, %324 : vector<16x32xf32>
    %cst_200 = arith.constant dense<0.000000e+00> : vector<16xf32>
    %326 = vector.multi_reduction <add>, %325, %cst_200 [1] : vector<16x32xf32> to vector<16xf32>
    %327 = vector.shape_cast %326 : vector<16xf32> to vector<16x1xf32>
    %cst_201 = arith.constant 3.200000e+01 : f32
    %328 = vector.broadcast %cst_201 : f32 to vector<16x1xf32>
    %329 = arith.divf %327, %328 : vector<16x1xf32>
    %330 = vector.broadcast %322 : vector<16x1xf32> to vector<16x32xf32>
    %331 = arith.subf %316, %330 : vector<16x32xf32>
    %cst_202 = arith.constant 9.99999996E-13 : f32
    %332 = vector.broadcast %cst_202 : f32 to vector<16x1xf32>
    %333 = arith.addf %329, %332 : vector<16x1xf32>
    %334 = math.rsqrt %333 : vector<16x1xf32>
    %335 = vector.broadcast %334 : vector<16x1xf32> to vector<16x32xf32>
    %336 = arith.mulf %331, %335 : vector<16x32xf32>
    %337 = vector.broadcast %317 : vector<1x32xf32> to vector<16x32xf32>
    %338 = arith.mulf %336, %337 : vector<16x32xf32>
    %339 = vector.broadcast %318 : vector<1x32xf32> to vector<16x32xf32>
    %340 = arith.addf %338, %339 : vector<16x32xf32>
    %c1_203 = arith.constant 1 : index
    %c0_204 = arith.constant 0 : index
    %c0_205 = arith.constant 0 : index
    %341 = vector.load %arg7[%c1_203, %c0_204, %c0_205] : memref<2x32x64xf32, #tpu.memory_space<vmem>>, vector<1x32x64xf32>
    %342 = vector.shape_cast %341 : vector<1x32x64xf32> to vector<32x64xf32>
    %cst_206 = arith.constant dense<0.000000e+00> : vector<16x64xf32>
    %343 = tpu.matmul %340, %342, %cst_206 {dimension_numbers = #tpu.dot_dimension_numbers<[1], [0], [0], [1], [0, 0, 1, 1], [], []>} : vector<16x32xf32>, vector<32x64xf32>, vector<16x64xf32> -> vector<16x64xf32>
    %c1_207 = arith.constant 1 : index
    %c0_208 = arith.constant 0 : index
    %c0_209 = arith.constant 0 : index
    %344 = vector.load %arg8[%c1_207, %c0_208, %c0_209] : memref<2x1x64xf32, #tpu.memory_space<vmem>>, vector<1x1x64xf32>
    %345 = vector.shape_cast %344 : vector<1x1x64xf32> to vector<1x64xf32>
    %346 = vector.broadcast %345 : vector<1x64xf32> to vector<16x64xf32>
    %347 = arith.addf %343, %346 : vector<16x64xf32>
    %cst_210 = arith.constant 5.000000e-01 : f32
    %348 = vector.broadcast %cst_210 : f32 to vector<16x64xf32>
    %349 = arith.mulf %348, %347 : vector<16x64xf32>
    %cst_211 = arith.constant 4.471500e-02 : f32
    %350 = vector.broadcast %cst_211 : f32 to vector<16x64xf32>
    %351 = arith.mulf %350, %347 : vector<16x64xf32>
    %352 = arith.mulf %351, %347 : vector<16x64xf32>
    %353 = arith.mulf %352, %347 : vector<16x64xf32>
    %354 = arith.addf %347, %353 : vector<16x64xf32>
    %cst_212 = arith.constant 0.797884583 : f32
    %355 = vector.broadcast %cst_212 : f32 to vector<16x64xf32>
    %356 = arith.mulf %355, %354 : vector<16x64xf32>
    %357 = math.tanh %356 : vector<16x64xf32>
    %cst_213 = arith.constant 1.000000e+00 : f32
    %358 = vector.broadcast %cst_213 : f32 to vector<16x64xf32>
    %359 = arith.addf %358, %357 : vector<16x64xf32>
    %360 = arith.mulf %349, %359 : vector<16x64xf32>
    %c1_214 = arith.constant 1 : index
    %c0_215 = arith.constant 0 : index
    %c0_216 = arith.constant 0 : index
    %361 = vector.load %arg9[%c1_214, %c0_215, %c0_216] : memref<2x64x32xf32, #tpu.memory_space<vmem>>, vector<1x64x32xf32>
    %362 = vector.shape_cast %361 : vector<1x64x32xf32> to vector<64x32xf32>
    %cst_217 = arith.constant dense<0.000000e+00> : vector<16x32xf32>
    %363 = tpu.matmul %360, %362, %cst_217 {dimension_numbers = #tpu.dot_dimension_numbers<[1], [0], [0], [1], [0, 0, 1, 1], [], []>} : vector<16x64xf32>, vector<64x32xf32>, vector<16x32xf32> -> vector<16x32xf32>
    %364 = vector.extract_strided_slice %215 {offsets = [3, 0], sizes = [1, 32], strides = [1, 1]} : vector<6x32xf32> to vector<1x32xf32>
    %365 = vector.broadcast %364 : vector<1x32xf32> to vector<16x32xf32>
    %366 = arith.addf %363, %365 : vector<16x32xf32>
    %367 = arith.addf %340, %366 : vector<16x32xf32>
    %368 = vector.extract_strided_slice %215 {offsets = [4, 0], sizes = [1, 32], strides = [1, 1]} : vector<6x32xf32> to vector<1x32xf32>
    %369 = vector.extract_strided_slice %215 {offsets = [5, 0], sizes = [1, 32], strides = [1, 1]} : vector<6x32xf32> to vector<1x32xf32>
    %cst_218 = arith.constant dense<0.000000e+00> : vector<16xf32>
    %370 = vector.multi_reduction <add>, %367, %cst_218 [1] : vector<16x32xf32> to vector<16xf32>
    %371 = vector.shape_cast %370 : vector<16xf32> to vector<16x1xf32>
    %cst_219 = arith.constant 3.200000e+01 : f32
    %372 = vector.broadcast %cst_219 : f32 to vector<16x1xf32>
    %373 = arith.divf %371, %372 : vector<16x1xf32>
    %374 = vector.broadcast %373 : vector<16x1xf32> to vector<16x32xf32>
    %375 = arith.subf %367, %374 : vector<16x32xf32>
    %376 = arith.mulf %375, %375 : vector<16x32xf32>
    %cst_220 = arith.constant dense<0.000000e+00> : vector<16xf32>
    %377 = vector.multi_reduction <add>, %376, %cst_220 [1] : vector<16x32xf32> to vector<16xf32>
    %378 = vector.shape_cast %377 : vector<16xf32> to vector<16x1xf32>
    %cst_221 = arith.constant 3.200000e+01 : f32
    %379 = vector.broadcast %cst_221 : f32 to vector<16x1xf32>
    %380 = arith.divf %378, %379 : vector<16x1xf32>
    %381 = vector.broadcast %373 : vector<16x1xf32> to vector<16x32xf32>
    %382 = arith.subf %367, %381 : vector<16x32xf32>
    %cst_222 = arith.constant 9.99999996E-13 : f32
    %383 = vector.broadcast %cst_222 : f32 to vector<16x1xf32>
    %384 = arith.addf %380, %383 : vector<16x1xf32>
    %385 = math.rsqrt %384 : vector<16x1xf32>
    %386 = vector.broadcast %385 : vector<16x1xf32> to vector<16x32xf32>
    %387 = arith.mulf %382, %386 : vector<16x32xf32>
    %388 = vector.broadcast %368 : vector<1x32xf32> to vector<16x32xf32>
    %389 = arith.mulf %387, %388 : vector<16x32xf32>
    %390 = vector.broadcast %369 : vector<1x32xf32> to vector<16x32xf32>
    %391 = arith.addf %389, %390 : vector<16x32xf32>
    %c0_223 = arith.constant 0 : index
    %c0_224 = arith.constant 0 : index
    %392 = vector.load %arg11[%c0_223, %c0_224] : memref<32x128xf32, #tpu.memory_space<vmem>>, vector<32x128xf32>
    %cst_225 = arith.constant dense<0.000000e+00> : vector<16x128xf32>
    %393 = tpu.matmul %391, %392, %cst_225 {dimension_numbers = #tpu.dot_dimension_numbers<[1], [0], [0], [1], [0, 0, 1, 1], [], []>} : vector<16x32xf32>, vector<32x128xf32>, vector<16x128xf32> -> vector<16x128xf32>
    %c0_226 = arith.constant 0 : index
    %c0_227 = arith.constant 0 : index
    %394 = vector.load %arg12[%c0_226, %c0_227] : memref<1x128xf32, #tpu.memory_space<vmem>>, vector<1x128xf32>
    %395 = vector.broadcast %394 : vector<1x128xf32> to vector<16x128xf32>
    %396 = arith.addf %393, %395 : vector<16x128xf32>
    %c0_228 = arith.constant 0 : index
    %c0_229 = arith.constant 0 : index
    %397 = vector.load %arg13[%c0_228, %c0_229] : memref<16x128xf32, #tpu.memory_space<vmem>>, vector<16x128xf32>
    tpu.vector_store %arg13[%c0_228, %c0_229], %396 {strides = array<i32>} : memref<16x128xf32, #tpu.memory_space<vmem>>, vector<16x128xf32>,
    return
  }
}

</mosaic_0001>

<bundles_post_ra>
// kernel: bert_token_classifier.1
= control target key start
LH: loop header
LB: loop body
LE: loop exit
PB: predicated region body
PF: predicated region fallthrough
CT: control target
= control target key end

     0   :  { %vm47_vm0 = vcmask 261120   ;;  %v75_v31 = vlaneseq  ;;  %vm357_vm1 = vcmask 64512   ;;  %vm1474_vm5 = vcmask 130048   ;;  %s6631_s0 = inlined_call_operand.vmem [shape: f32[16,32], index: 0, kind: input, shape index: {}]   ;;  %s6632_s2 = inlined_call_operand.vmem [shape: f32[8,32,8], index: 2, kind: input, shape index: {}]   ;;  %s6633_s4 = inlined_call_operand.vmem [shape: f32[8,32,8], index: 4, kind: input, shape index: {}]   ;;  %s6634_s6 = inlined_call_operand.vmem [shape: f32[8,32,32], index: 6, kind: input, shape index: {}]   ;;  %s6635_s1 = inlined_call_operand.vmem [shape: f32[2,32], index: 1, kind: input, shape index: {}]   ;;  %s6636_s5 = inlined_call_operand.vmem [shape: f32[8,1,8], index: 5, kind: input, shape index: {}]   ;;  %s6637_s3 = inlined_call_operand.vmem [shape: f32[8,1,8], index: 3, kind: input, shape index: {}]   ;;  %s6638_s10 = inlined_call_operand.vmem [shape: f32[2,6,32], index: 10, kind: input, shape index: {}]   ;;  %s6639_s7 = inlined_call_operand.vmem [shape: f32[2,32,64], index: 7, kind: input, shape index: {}]   ;;  %s6640_s9 = inlined_call_operand.vmem [shape: f32[2,64,32], index: 9, kind: input, shape index: {}]   ;;  %s6641_s8 = inlined_call_operand.vmem [shape: f32[2,1,64], index: 8, kind: input, shape index: {}]   ;;  %s6642_s11 = inlined_call_operand.vmem [shape: f32[32,128], index: 11, kind: input, shape index: {}]   ;;  %s6643_s12 = inlined_call_operand.vmem [shape: f32[1,128], index: 12, kind: input, shape index: {}]   ;;  %s6644_s13 = inlined_call_operand.vmem [shape: f32[16,128], index: 13, kind: output, shape index: {}]  }
   0x1   :  { %v45_v0 = vld [vmem:[%s6631_s0] sm:$0xff]  ;;  %v46_v1 = vld [vmem:[%s6631_s0 + $0x8] sm:$0xff]  ;;  %v102_v20 = vld [vmem:[%s6632_s2 + $0x10] sm:$0xff]  ;;  %vm2059_vm6 = vcmask 523264  }
   0x2   :  { %v48_v2 = vsel %vm47_vm0, %v45_v0, 0.0  ;;  %v51_v3 = vsel %vm47_vm0, %v46_v1, 0.0  ;;  %v100_v14 = vld [vmem:[%s6632_s2] sm:$0xff]  ;;  %v101_v15 = vld [vmem:[%s6632_s2 + $0x8] sm:$0xff]  ;;  %v103_v21 = vld [vmem:[%s6632_s2 + $0x18] sm:$0xff]  ;;  %v5842_v35 = vshrl.u32 %v75_v31, 7 }
   0x3   :  { %49 = vadd.xlane.f32.xlu0 %v48_v2  ;;  %v5297_v16 = vpack.c.bf16 %v101_v15, %v100_v14  ;;  %v192_v17 = vld [vmem:[%s6633_s4] sm:$0xff]  ;;  %v193_v18 = vld [vmem:[%s6633_s4 + $0x8] sm:$0xff]  ;;  %v5301_v22 = vpack.c.bf16 %v103_v21, %v102_v20  ;;  %v194_v23 = vld [vmem:[%s6633_s4 + $0x10] sm:$0xff] }
   0x4   :  { %v5305_v19 = vpack.c.bf16 %v193_v18, %v192_v17  ;;  %v195_v24 = vld [vmem:[%s6633_s4 + $0x18] sm:$0xff]  ;;  %v278_v26 = vld [vmem:[%s6634_s6] sm:$0xff]  ;;  %v279_v27 = vld [vmem:[%s6634_s6 + $0x8] sm:$0xff]  ;;  %v5845_v37 = vsub.s32 0, %v5842_v35  ;;  %v5851_v39 = vsub.s32 1, %v5842_v35 }
   0x5   :  { %5298 = vmatprep.subr.bf16.mxu0 %v5297_v16  ;;  %v5309_v25 = vpack.c.bf16 %v195_v24, %v194_v23  ;;  %v5313_v28 = vpack.c.bf16 %v279_v27, %v278_v26  ;;  %v44_v38 = vld [vmem:[%s6635_s1] sm:$0x3]  ;;  %v280_v48 = vld [vmem:[%s6634_s6 + $0x10] sm:$0xff]  ;;  %v281_v49 = vld [vmem:[%s6634_s6 + $0x18] sm:$0xff] }
   0x6   :  { %5300 = vmatpush3.bf16.msra.mxu0 %v5297_v16  ;;  %5306 = vmatprep.subr.bf16.mxu1 %v5305_v19  ;;  %v78_v40 = vrot.slane %v44_v38, %v5845_v37  ;;  %v84_v42 = vrot.slane %v44_v38, %v5851_v39  ;;  %v5317_v52 = vpack.c.bf16 %v281_v49, %v280_v48  ;;  %v4379_v53 = vld [vmem:[%s6632_s2 + $0x20] sm:$0xff]  ;;  %v4380_v54 = vld [vmem:[%s6632_s2 + $0x28] sm:$0xff]  ;;  %v4381_v56 = vld [vmem:[%s6632_s2 + $0x30] sm:$0xff] }
   0x7   :  { %52 = vadd.xlane.f32.xlu0 %v51_v3  ;;  %5308 = vmatpush3.bf16.msra.mxu1 %v5305_v19  ;;  %v5327_v55 = vpack.c.bf16 %v4380_v54, %v4379_v53  ;;  %v4382_v57 = vld [vmem:[%s6632_s2 + $0x38] sm:$0xff]  ;;  %v4395_v59 = vld [vmem:[%s6634_s6 + $0x20] sm:$0xff]  ;;  %v4396_v60 = vld [vmem:[%s6634_s6 + $0x28] sm:$0xff] }
   0x8   :  { %5302 = vmatprep.subr.bf16.mxu0 %v5301_v22  ;;  %5310 = vmatprep.subr.bf16.mxu1 %v5309_v25  ;;  %v5331_v58 = vpack.c.bf16 %v4382_v57, %v4381_v56  ;;  %v5343_v61 = vpack.c.bf16 %v4396_v60, %v4395_v59  ;;  %v4397_v62 = vld [vmem:[%s6634_s6 + $0x30] sm:$0xff]  ;;  %v4398_v63 = vld [vmem:[%s6634_s6 + $0x38] sm:$0xff]  ;;  %v4406_v2 = vld [vmem:[%s6632_s2 + $0x48] sm:$0xff] }
   0x9   :  { %v4432_v14 = vld [vmem:[%s6632_s2 + $0x68] sm:$0xff]  ;;  %v4433_v16 = vld [vmem:[%s6632_s2 + $0x70] sm:$0xff]  ;;  %v4434_v17 = vld [vmem:[%s6632_s2 + $0x78] sm:$0xff] }
   0xa   :  { %5304 = vmatpush3.bf16.msra.mxu0 %v5301_v22  ;;  %v5391_v18 = vpack.c.bf16 %v4434_v17, %v4433_v16  ;;  %v4447_v19 = vld [vmem:[%s6634_s6 + $0x60] sm:$0xff]  ;;  %v4448_v20 = vld [vmem:[%s6634_s6 + $0x68] sm:$0xff]  ;;  %v4449_v22 = vld [vmem:[%s6634_s6 + $0x70] sm:$0xff] }
   0xb   :  { %5312 = vmatpush3.bf16.msra.mxu1 %v5309_v25  ;;  %5314 = vmatprep.subr.bf16.mxu0 %v5313_v28  ;;  %v5403_v21 = vpack.c.bf16 %v4448_v20, %v4447_v19  ;;  %v4450_v23 = vld [vmem:[%s6634_s6 + $0x78] sm:$0xff]  ;;  %v4370_v25 = vld [vmem:[%s6636_s5] ss:$0 sm:$0xff]  ;;  %vm5987_vm2 = vmpackc.low %vm357_vm1, %vm357_vm1 }
   0xc   :  { %v5407_v24 = vpack.c.bf16 %v4450_v23, %v4449_v22  ;;  %v4367_v26 = vld [vmem:[%s6637_s3] ss:$0 sm:$0xff]  ;;  %v4410_v60 = vld [vmem:[%s6637_s3 + $0x2] ss:$0 sm:$0xff]  ;;  %v4392_v23 = vld [vmem:[%s6636_s5 + $0x1] ss:$0 sm:$0xff] }
  0x90   :  { %v50_v4 = vpop.xlane.xlu0 %49 }
  0x91   :  { %v55_v5 = vmul.f32 0.03125, %v50_v4  ;;  %v4407_v4 = vld [vmem:[%s6632_s2 + $0x50] sm:$0xff] }
  0x93   :  { %v57_v6 = vsub.f32 %v45_v0, %v55_v5  ;;  %v5347_v0 = vpack.c.bf16 %v4398_v63, %v4397_v62  ;;  %v4408_v5 = vld [vmem:[%s6632_s2 + $0x58] sm:$0xff] }
  0x94   :  { %v53_v7 = vpop.xlane.xlu0 %52 }
  0x95   :  { %v56_v8 = vmul.f32 0.03125, %v53_v7  ;;  %v59_v9 = vmul.f32 %v57_v6, %v57_v6  ;;  %v4421_v7 = vld [vmem:[%s6634_s6 + $0x40] sm:$0xff] }
  0x97   :  { %v58_v10 = vsub.f32 %v46_v1, %v56_v8  ;;  %v61_v11 = vsel %vm47_vm0, %v59_v9, 0.0  ;;  %v4405_v1 = vld [vmem:[%s6632_s2 + $0x40] sm:$0xff]  ;;  %v4422_v8 = vld [vmem:[%s6634_s6 + $0x48] sm:$0xff] }
  0x98   :  { %62 = vadd.xlane.f32.xlu1 %v61_v11  ;;  %v5357_v3 = vpack.c.bf16 %v4406_v2, %v4405_v1  ;;  %v5373_v9 = vpack.c.bf16 %v4422_v8, %v4421_v7  ;;  %v4424_v11 = vld [vmem:[%s6634_s6 + $0x58] sm:$0xff] }
  0x99   :  { %v60_v12 = vmul.f32 %v58_v10, %v58_v10 }
  0x9b   :  { %v64_v13 = vsel %vm47_vm0, %v60_v12, 0.0 }
  0x9c   :  { %65 = vadd.xlane.f32.xlu1 %v64_v13  ;;  %v4431_v13 = vld [vmem:[%s6632_s2 + $0x60] sm:$0xff] }
  0x9d   :  { %v5387_v15 = vpack.c.bf16 %v4432_v14, %v4431_v13  ;;  %v90_v14 = vshra.s32 %v5842_v35, 3 }
 0x125   :  { %v63_v29 = vpop.xlane.xlu1 %62 }
 0x126   :  { %v67_v30 = vmul.f32 0.03125, %v63_v29 }
 0x128   :  { %v69_v32 = vadd.f32 1e-12, %v67_v30 }
 0x129   :  { %v66_v33 = vpop.xlane.xlu1 %65 }
 0x12a   :  { %5638 = vrsqrt.f32 %v69_v32  ;;  %v68_v34 = vmul.f32 0.03125, %v66_v33  ;;  %v4387_v33 = vld [vmem:[%s6633_s4 + $0x20] sm:$0xff] }
 0x12c   :  { %v70_v36 = vadd.f32 1e-12, %v68_v34  ;;  %v4388_v34 = vld [vmem:[%s6633_s4 + $0x28] sm:$0xff] }
 0x12e   :  { %5640 = vrsqrt.f32 %v70_v36 }
 0x134   :  { %v5639_v41 = vpop.eup %5638 }
 0x135   :  { %v73_v43 = vmul.f32 %v5639_v41, %v57_v6  ;;  %v5361_v6 = vpack.c.bf16 %v4408_v5, %v4407_v4 }
 0x137   :  { %v79_v44 = vmul.f32 %v78_v40, %v73_v43 }
 0x138   :  { %v5641_v45 = vpop.eup %5640 }
 0x139   :  { %v5855_v46 = vadd.f32 %v84_v42, %v79_v44  ;;  %v74_v47 = vmul.f32 %v5641_v45, %v58_v10  ;;  %v4423_v10 = vld [vmem:[%s6634_s6 + $0x50] sm:$0xff] }
 0x13a   :  { %v5377_v12 = vpack.c.bf16 %v4424_v11, %v4423_v10  ;;  %v4389_v45 = vld [vmem:[%s6633_s4 + $0x30] sm:$0xff]  ;;  %v89_v10 = vadd.s32 8, %v5842_v35  ;;  %v93_v11 = vand.u32 127, %v75_v31 }
 0x13b   :  { %v80_v50 = vmul.f32 %v78_v40, %v74_v47  ;;  %4858 = vmatprep.mubr.msk.f32.mxu0 %vm47_vm0, %v5855_v46  ;;  %4869 = vmatprep.mubr.msk.f32.mxu1 %vm47_vm0, %v5855_v46  ;;  %v4390_v47 = vld [vmem:[%s6633_s4 + $0x38] sm:$0xff] }
 0x13c   :  { %v94_v13 = vshra.s32 %v93_v11, 3 }
 0x13d   :  { %v5867_v51 = vadd.f32 %v84_v42, %v80_v50  ;;  %v5335_v42 = vpack.c.bf16 %v4388_v34, %v4387_v33  ;;  %v5339_v50 = vpack.c.bf16 %v4390_v47, %v4389_v45  ;;  %v4415_v33 = vld [vmem:[%s6633_s4 + $0x50] sm:$0xff]  ;;  %v4416_v34 = vld [vmem:[%s6633_s4 + $0x58] sm:$0xff] }
 0x13e   :  { %vm95_vm4 = vcmp.eq.s32.totalorder %v90_v14, %v94_v13 }
 0x13f   :  { %4859 = vmatmul.mubr.msk.f32.vlgmr.msra.gmra.mrb[0].mxu0 %vm47_vm0, %v5867_v51  ;;  %4870 = vmatmul.mubr.msk.f32.vlgmr.msra.gmra.mrb[0].mxu1 %vm47_vm0, %v5867_v51 }
 0x140   :  { %5316 = vmatpush3.bf16.msra.mxu0 %v5313_v28  ;;  %4880 = vmatprep.mubr.msk.f32.mxu0 %vm47_vm0, %v5855_v46 }
 0x141   :  { %5318 = vmatprep.subr.bf16.mxu0 %v5317_v52 }
 0x144   :  { %5320 = vmatpush3.bf16.msra.mxu0 %v5317_v52  ;;  %v4384_v52 = vld [vmem:[%s6637_s3 + $0x1] ss:$0 sm:$0xff] }
 0x145   :  { %5328 = vmatprep.subr.bf16.mxu0 %v5327_v55 }
 0x147   :  { %4881 = vmatmul.mubr.msk.f32.vlgmr.msra.gmra.mrb[2].mxu0 %vm47_vm0, %v5867_v51 }
 0x148   :  { %5330 = vmatpush3.bf16.msra.mxu0 %v5327_v55  ;;  %4898 = vmatprep.mubr.msk.f32.mxu0 %vm47_vm0, %v5855_v46 }
 0x149   :  { %5332 = vmatprep.subr.bf16.mxu0 %v5331_v58 }
 0x14c   :  { %5334 = vmatpush3.bf16.msra.mxu0 %v5331_v58 }
 0x14d   :  { %5344 = vmatprep.subr.bf16.mxu0 %v5343_v61 }
 0x14f   :  { %4899 = vmatmul.mubr.msk.f32.vlgmr.msra.gmra.mrb[4].mxu0 %vm47_vm0, %v5867_v51 }
 0x150   :  { %5346 = vmatpush3.bf16.msra.mxu0 %v5343_v61  ;;  %4920 = vmatprep.mubr.msk.f32.mxu0 %vm47_vm0, %v5855_v46 }
 0x151   :  { %5348 = vmatprep.subr.bf16.mxu0 %v5347_v0 }
 0x154   :  { %5350 = vmatpush3.bf16.msra.mxu0 %v5347_v0 }
 0x155   :  { %5358 = vmatprep.subr.bf16.mxu0 %v5357_v3 }
 0x157   :  { %4921 = vmatmul.mubr.msk.f32.vlgmr.msra.gmra.mrb[6].mxu0 %vm47_vm0, %v5867_v51 }
 0x158   :  { %5360 = vmatpush3.bf16.msra.mxu0 %v5357_v3  ;;  %4938 = vmatprep.mubr.msk.f32.mxu0 %vm47_vm0, %v5855_v46  ;;  %v6024_v3 = vld [vmem:[%s6637_s3 + $0x3] ss:$0 sm:$0xff] }
 0x159   :  { %5362 = vmatprep.subr.bf16.mxu0 %v5361_v6 }
 0x15c   :  { %5364 = vmatpush3.bf16.msra.mxu0 %v5361_v6 }
 0x15d   :  { %5374 = vmatprep.subr.bf16.mxu0 %v5373_v9 }
 0x15f   :  { %4939 = vmatmul.mubr.msk.f32.vlgmr.msra.gmra.mrb[8].mxu0 %vm47_vm0, %v5867_v51 }
 0x160   :  { %5376 = vmatpush3.bf16.msra.mxu0 %v5373_v9  ;;  %4960 = vmatprep.mubr.msk.f32.mxu0 %vm47_vm0, %v5855_v46 }
 0x161   :  { %5378 = vmatprep.subr.bf16.mxu0 %v5377_v12 }
 0x164   :  { %5380 = vmatpush3.bf16.msra.mxu0 %v5377_v12  ;;  %v91_v12 = vshra.s32 %v89_v10, 3 }
 0x165   :  { %5388 = vmatprep.subr.bf16.mxu0 %v5387_v15 }
 0x166   :  { %vm96_vm3 = vcmp.eq.s32.totalorder %v91_v12, %v94_v13 }
 0x167   :  { %4961 = vmatmul.mubr.msk.f32.vlgmr.msra.gmra.mrb[10].mxu0 %vm47_vm0, %v5867_v51 }
 0x168   :  { %5390 = vmatpush3.bf16.msra.mxu0 %v5387_v15  ;;  %4978 = vmatprep.mubr.msk.f32.mxu0 %vm47_vm0, %v5855_v46  ;;  %v5730_v15 = vmov -1e+30  }
 0x169   :  { %5392 = vmatprep.subr.bf16.mxu0 %v5391_v18  ;;  %v6036_v16 = vsel %vm96_vm3, 0.0, %v5730_v15  ;;  %v6038_v17 = vsel %vm95_vm4, 0.0, %v5730_v15 }
 0x16c   :  { %5394 = vmatpush3.bf16.msra.mxu0 %v5391_v18 }
 0x16d   :  { %5404 = vmatprep.subr.bf16.mxu0 %v5403_v21 }
 0x16f   :  { %4979 = vmatmul.mubr.msk.f32.vlgmr.msra.gmra.mrb[12].mxu0 %vm47_vm0, %v5867_v51 }
 0x170   :  { %5406 = vmatpush3.bf16.msra.mxu0 %v5403_v21  ;;  %5000 = vmatprep.mubr.msk.f32.mxu0 %vm47_vm0, %v5855_v46 }
 0x171   :  { %5408 = vmatprep.subr.bf16.mxu0 %v5407_v24 }
 0x174   :  { %5410 = vmatpush3.bf16.msra.mxu0 %v5407_v24 }
 0x177   :  { %5001 = vmatmul.mubr.msk.f32.vlgmr.msra.gmra.mrb[14].mxu0 %vm47_vm0, %v5867_v51 }
 0x212   :  { %v4860_v27 = vpop.f32.mrb[0].mxu0  ;;  %v4871_v28 = vpop.f32.mrb[0].mxu1 }
 0x213   :  { %v275_v29 = vadd.f32 %v4871_v28, %v4370_v25  ;;  %v183_v30 = vpop.f32.mrb[1].mxu0  ;;  %v269_v32 = vpop.f32.mrb[1].mxu1  ;;  %v189_v49 = vadd.f32 %v4860_v27, %v4367_v26  ;;  %v4413_v27 = vld [vmem:[%s6633_s4 + $0x40] sm:$0xff]  ;;  %v4414_v28 = vld [vmem:[%s6633_s4 + $0x48] sm:$0xff] }
 0x214   :  { %v184_v36 = vadd.f32 %v4367_v26, %v183_v30  ;;  %v270_v38 = vadd.f32 %v4370_v25, %v269_v32  ;;  %v5365_v32 = vpack.c.bf16 %v4414_v28, %v4413_v27 }
 0x216   :  { %v5321_v41 = vpack.c.bf16 %v275_v29, %v270_v38  ;;  %4887 = vmatprep.mubr.msk.f32.mxu1 %vm357_vm1, %v184_v36  ;;  %v5369_v36 = vpack.c.bf16 %v4416_v34, %v4415_v33 }
 0x218   :  { %5323 = vmatprep.subr.msk.bf16.mxu1 %vm5987_vm2, %v5321_v41 }
 0x219   :  { %5326 = vmatpush3.bf16.xpose.msk.msra.mxu1 %vm5987_vm2, %v5321_v41 }
 0x21a   :  { %v4882_v43 = vpop.f32.mrb[2].mxu0  ;;  %5336 = vmatprep.subr.bf16.mxu1 %v5335_v42 }
 0x21b   :  { %v348_v44 = vpop.f32.mrb[3].mxu0 }
 0x21c   :  { %v5421_v48 = vpack.c.bf16 %v4882_v43, %v348_v44  ;;  %v4418_v43 = vld [vmem:[%s6636_s5 + $0x2] ss:$0 sm:$0xff] }
 0x21e   :  { %5422 = vmatprep.subr.bf16.mxu0 %v5421_v48 }
 0x21f   :  { %5424 = vmatpush3.bf16.msra.mxu0 %v5421_v48  ;;  %v4439_v48 = vld [vmem:[%s6633_s4 + $0x60] sm:$0xff] }
 0x220   :  { %4888 = vmatmul.mubr.msk.f32.vlgmr.msra.gmra.mrb[2].mxu1 %vm357_vm1, %v189_v49  ;;  %v4440_v49 = vld [vmem:[%s6633_s4 + $0x68] sm:$0xff] }
 0x221   :  { %5338 = vmatpush3.bf16.msra.mxu1 %v5335_v42  ;;  %4909 = vmatprep.mubr.msk.f32.mxu1 %vm47_vm0, %v5855_v46 }
 0x222   :  { %v4900_v53 = vpop.f32.mrb[4].mxu0  ;;  %5340 = vmatprep.subr.bf16.mxu1 %v5339_v50 }
 0x223   :  { %v530_v54 = vadd.f32 %v4900_v53, %v4384_v52  ;;  %v524_v55 = vpop.f32.mrb[5].mxu0  ;;  %v5395_v53 = vpack.c.bf16 %v4440_v49, %v4439_v48 }
 0x224   :  { %v525_v56 = vadd.f32 %v4384_v52, %v524_v55  ;;  %v4442_v55 = vld [vmem:[%s6633_s4 + $0x78] sm:$0xff] }
 0x225   :  { %5342 = vmatpush3.bf16.msra.mxu1 %v5339_v50 }
 0x228   :  { %4910 = vmatmul.mubr.msk.f32.vlgmr.msra.gmra.mrb[4].mxu1 %vm47_vm0, %v5867_v51 }
 0x229   :  { %4927 = vmatprep.mubr.msk.f32.mxu1 %vm357_vm1, %v525_v56 }
 0x22a   :  { %v4922_v57 = vpop.f32.mrb[6].mxu0 }
 0x22b   :  { %v692_v58 = vpop.f32.mrb[7].mxu0 }
 0x22c   :  { %v6011_v59 = vpack.c.bf16 %v4922_v57, %v692_v58 }
 0x232   :  { %v4940_v61 = vpop.f32.mrb[8].mxu0 }
 0x233   :  { %v6016_v62 = vadd.f32 %v4940_v61, %v4410_v60  ;;  %v867_v63 = vpop.f32.mrb[9].mxu0 }
 0x234   :  { %v868_v38 = vadd.f32 %v4410_v60, %v867_v63 }
 0x23a   :  { %v4962_v0 = vpop.f32.mrb[10].mxu0 }
 0x23b   :  { %v1035_v1 = vpop.f32.mrb[11].mxu0 }
 0x23c   :  { %v6018_v2 = vpack.c.bf16 %v4962_v0, %v1035_v1 }
 0x23e   :  { %5426 = vmatprep.subr.bf16.mxu0 %v6018_v2 }
 0x242   :  { %v4980_v4 = vpop.f32.mrb[12].mxu0 }
 0x243   :  { %v6027_v5 = vadd.f32 %v4980_v4, %v6024_v3  ;;  %v6029_v6 = vpop.f32.mrb[13].mxu0 }
 0x244   :  { %v1211_v57 = vadd.f32 %v6024_v3, %v6029_v6  ;;  %v4444_v6 = vld [vmem:[%s6636_s5 + $0x3] ss:$0 sm:$0xff] }
 0x24a   :  { %v5002_v7 = vpop.f32.mrb[14].mxu0 }
 0x24b   :  { %v1378_v8 = vpop.f32.mrb[15].mxu0 }
 0x24c   :  { %v6031_v9 = vpack.c.bf16 %v5002_v7, %v1378_v8 }
 0x2f3   :  { %v4889_v18 = vpop.f32.mrb[2].mxu1 }
 0x2f4   :  { %v6041_v19 = vadd.f32 %v4889_v18, %v6036_v16  ;;  %v436_v20 = vpop.f32.mrb[3].mxu1 }
 0x2f5   :  { %v437_v21 = vadd.f32 %v436_v20, %v6038_v17 }
 0x2f6   :  { %v1478_v31 = vsel %vm1474_vm5, %v6041_v19, -inf }
 0x2f7   :  { %1479 = vmax.xlane.f32.xlu1 %v1478_v31  ;;  %v1475_v22 = vsel %vm1474_vm5, %v437_v21, -inf }
 0x2f8   :  { %1476 = vmax.xlane.f32.xlu0 %v1475_v22 }
 0x2fb   :  { %v4911_v24 = vpop.f32.mrb[4].mxu1 }
 0x2fc   :  { %v618_v25 = vadd.f32 %v4911_v24, %v4392_v23  ;;  %v612_v26 = vpop.f32.mrb[5].mxu1 }
 0x2fd   :  { %v613_v29 = vadd.f32 %v4392_v23, %v612_v26 }
 0x2ff   :  { %v5351_v30 = vpack.c.bf16 %v618_v25, %v613_v29 }
 0x301   :  { %5353 = vmatprep.subr.msk.bf16.mxu1 %vm5987_vm2, %v5351_v30 }
 0x302   :  { %5356 = vmatpush3.bf16.xpose.msk.msra.mxu1 %vm5987_vm2, %v5351_v30 }
 0x303   :  { %5366 = vmatprep.subr.bf16.mxu1 %v5365_v32 }
 0x309   :  { %4928 = vmatmul.mubr.msk.f32.vlgmr.msra.gmra.mrb[6].mxu1 %vm357_vm1, %v530_v54  ;;  %v4441_v54 = vld [vmem:[%s6633_s4 + $0x70] sm:$0xff] }
 0x30a   :  { %5368 = vmatpush3.bf16.msra.mxu1 %v5365_v32  ;;  %4949 = vmatprep.mubr.msk.f32.mxu1 %vm47_vm0, %v5855_v46  ;;  %v5399_v56 = vpack.c.bf16 %v4442_v55, %v4441_v54 }
 0x30b   :  { %5370 = vmatprep.subr.bf16.mxu1 %v5369_v36 }
 0x30e   :  { %5372 = vmatpush3.bf16.msra.mxu1 %v5369_v36 }
 0x311   :  { %4950 = vmatmul.mubr.msk.f32.vlgmr.msra.gmra.mrb[8].mxu1 %vm47_vm0, %v5867_v51 }
 0x312   :  { %4967 = vmatprep.mubr.msk.f32.mxu1 %vm357_vm1, %v868_v38 }
 0x385   :  { %v1477_v58 = vpop.xlane.xlu0 %1476 }
 0x386   :  { %v1499_v60 = vsub.f32 %v437_v21, %v1477_v58 }
 0x388   :  { %v1507_v61 = vmul.f32 1.442695, %v1499_v60 }
 0x38a   :  { %5642 = vpow2.f32 %v1507_v61 }
 0x394   :  { %v5643_v20 = vpop.eup %5642 }
 0x395   :  { %v1523_v21 = vsel %vm1474_vm5, %v5643_v20, 0.0 }
 0x3dc   :  { %v4929_v41 = vpop.f32.mrb[6].mxu1 }
 0x3dd   :  { %v779_v42 = vpop.f32.mrb[7].mxu1  ;;  %v785_v8 = vadd.f32 %v4929_v41, %v6036_v16 }
 0x3de   :  { %v780_v7 = vadd.f32 %v779_v42, %v6038_v17  ;;  %v1480_v42 = vpop.xlane.xlu1 %1479 }
 0x3df   :  { %v1484_v18 = vsel %vm1474_vm5, %v785_v8, -inf }
 0x3e0   :  { %v1481_v11 = vsel %vm1474_vm5, %v780_v7, -inf }
 0x3e4   :  { %v4951_v44 = vpop.f32.mrb[8].mxu1 }
 0x3e5   :  { %v961_v45 = vadd.f32 %v4951_v44, %v4418_v43  ;;  %v955_v47 = vpop.f32.mrb[9].mxu1 }
 0x3e6   :  { %v956_v50 = vadd.f32 %v4418_v43, %v955_v47  ;;  %v1500_v43 = vsub.f32 %v6041_v19, %v1480_v42 }
 0x3e8   :  { %v5381_v52 = vpack.c.bf16 %v961_v45, %v956_v50  ;;  %v1509_v45 = vmul.f32 1.442695, %v1500_v43 }
 0x3ea   :  { %5383 = vmatprep.subr.msk.bf16.mxu1 %vm5987_vm2, %v5381_v52 }
 0x3eb   :  { %5386 = vmatpush3.bf16.xpose.msk.msra.mxu1 %vm5987_vm2, %v5381_v52 }
 0x3ec   :  { %5396 = vmatprep.subr.bf16.mxu1 %v5395_v53 }
 0x3f2   :  { %4968 = vmatmul.mubr.msk.f32.vlgmr.msra.gmra.mrb[10].mxu1 %vm357_vm1, %v6016_v62 }
 0x3f3   :  { %5398 = vmatpush3.bf16.msra.mxu1 %v5395_v53  ;;  %4989 = vmatprep.mubr.msk.f32.mxu1 %vm47_vm0, %v5855_v46 }
 0x3f4   :  { %5400 = vmatprep.subr.bf16.mxu1 %v5399_v56 }
 0x3f7   :  { %5402 = vmatpush3.bf16.msra.mxu1 %v5399_v56 }
 0x3fa   :  { %4990 = vmatmul.mubr.msk.f32.vlgmr.msra.gmra.mrb[12].mxu1 %vm47_vm0, %v5867_v51 }
 0x3fb   :  { %5007 = vmatprep.mubr.msk.f32.mxu1 %vm357_vm1, %v1211_v57 }
 0x4c5   :  { %v4969_v63 = vpop.f32.mrb[10].mxu1 }
 0x4c6   :  { %v1128_v62 = vadd.f32 %v4969_v63, %v6036_v16  ;;  %v1122_v0 = vpop.f32.mrb[11].mxu1 }
 0x4c7   :  { %v1123_v1 = vadd.f32 %v1122_v0, %v6038_v17 }
 0x4c8   :  { %v1490_v4 = vsel %vm1474_vm5, %v1128_v62, -inf }
 0x4c9   :  { %1491 = vmax.xlane.f32.xlu1 %v1490_v4  ;;  %v1487_v3 = vsel %vm1474_vm5, %v1123_v1, -inf }
 0x4ca   :  { %1488 = vmax.xlane.f32.xlu0 %v1487_v3 }
 0x4cd   :  { %v4991_v10 = vpop.f32.mrb[12].mxu1 }
 0x4ce   :  { %v1304_v12 = vadd.f32 %v4991_v10, %v4444_v6  ;;  %v1298_v13 = vpop.f32.mrb[13].mxu1  ;;  %1482 = vmax.xlane.f32.xlu0 %v1481_v11 }
 0x4cf   :  { %v1299_v14 = vadd.f32 %v4444_v6, %v1298_v13 }
 0x4d1   :  { %v5411_v15 = vpack.c.bf16 %v1304_v12, %v1299_v14 }
 0x4d2   :  { %1485 = vmax.xlane.f32.xlu0 %v1484_v18 }
 0x4d3   :  { %5413 = vmatprep.subr.msk.bf16.mxu1 %vm5987_vm2, %v5411_v15 }
 0x4d4   :  { %5416 = vmatpush3.bf16.xpose.msk.msra.mxu1 %vm5987_vm2, %v5411_v15 }
 0x4d5   :  { %5418 = vmatprep.subr.bf16.mxu1 %v6011_v59 }
 0x4d6   :  { %1524 = vadd.xlane.f32.xlu0 %v1523_v21 }
 0x4db   :  { %5008 = vmatmul.mubr.msk.f32.vlgmr.msra.gmra.mrb[14].mxu1 %vm357_vm1, %v6027_v5 }
 0x4dc   :  { %5420 = vmatpush3.bf16.msra.mxu1 %v6011_v59 }
 0x556   :  { %v1492_v44 = vpop.xlane.xlu1 %1491 }
 0x557   :  { %v1489_v31 = vpop.xlane.xlu0 %1488  ;;  %v1504_v47 = vsub.f32 %v1128_v62, %v1492_v44 }
 0x558   :  { %v1503_v22 = vsub.f32 %v1123_v1, %v1489_v31 }
 0x559   :  { %v1517_v48 = vmul.f32 1.442695, %v1504_v47 }
 0x55a   :  { %v1515_v23 = vmul.f32 1.442695, %v1503_v22 }
 0x55b   :  { %v1483_v24 = vpop.xlane.xlu0 %1482 }
 0x55c   :  { %5644 = vpow2.f32 %v1515_v23  ;;  %v1501_v25 = vsub.f32 %v780_v7, %v1483_v24 }
 0x55e   :  { %v1511_v26 = vmul.f32 1.442695, %v1501_v25 }
 0x55f   :  { %v1486_v27 = vpop.xlane.xlu0 %1485 }
 0x560   :  { %5646 = vpow2.f32 %v1511_v26  ;;  %v1502_v28 = vsub.f32 %v785_v8, %v1486_v27 }
 0x562   :  { %v1513_v29 = vmul.f32 1.442695, %v1502_v28 }
 0x563   :  { %v1525_v30 = vpop.xlane.xlu0 %1524 }
 0x564   :  { %5648 = vpow2.f32 %v1513_v29 }
 0x565   :  { %5650 = vrcp.f32 %v1525_v30 }
 0x566   :  { %v6120_v32 = vpop.eup %5644  ;;  %5652 = vpow2.f32 %v1509_v45 }
 0x567   :  { %v1535_v5 = vsel %vm1474_vm5, %v6120_v32, 0.0  ;;  %5654 = vpow2.f32 %v1517_v48 }
 0x568   :  { %1536 = vadd.xlane.f32.xlu0 %v1535_v5 }
 0x56a   :  { %v5647_v59 = vpop.eup %5646 }
 0x56b   :  { %v1529_v33 = vsel %vm1474_vm5, %v5647_v59, 0.0 }
 0x56c   :  { %1530 = vadd.xlane.f32.xlu0 %v1529_v33 }
 0x56e   :  { %v5649_v34 = vpop.eup %5648 }
 0x56f   :  { %v5651_v36 = vpop.eup %5650  ;;  %v1532_v38 = vsel %vm1474_vm5, %v5649_v34, 0.0 }
 0x570   :  { %1533 = vadd.xlane.f32.xlu0 %v1532_v38  ;;  %v1548_v41 = vmul.f32 %v5651_v36, %v5643_v20  ;;  %v5653_v56 = vpop.eup %5652 }
 0x571   :  { %v1526_v19 = vsel %vm1474_vm5, %v5653_v56, 0.0  ;;  %v5655_v57 = vpop.eup %5654 }
 0x572   :  { %5021 = vmatprep.mubr.msk.f32.mxu0 %vm1474_vm5, %v1548_v41  ;;  %v1538_v58 = vsel %vm1474_vm5, %v5655_v57, 0.0 }
 0x5ae   :  { %v5009_v49 = vpop.f32.mrb[14].mxu1 }
 0x5af   :  { %v1465_v50 = vpop.f32.mrb[15].mxu1  ;;  %v1471_v53 = vadd.f32 %v5009_v49, %v6036_v16 }
 0x5b0   :  { %v1466_v52 = vadd.f32 %v1465_v50, %v6038_v17 }
 0x5b1   :  { %v1496_v55 = vsel %vm1474_vm5, %v1471_v53, -inf }
 0x5b2   :  { %v1493_v54 = vsel %vm1474_vm5, %v1466_v52, -inf }
 0x5b3   :  { %1494 = vmax.xlane.f32.xlu1 %v1493_v54 }
 0x5b7   :  { %1497 = vmax.xlane.f32.xlu1 %v1496_v55 }
 0x5bb   :  { %1527 = vadd.xlane.f32.xlu1 %v1526_v19 }
 0x5bf   :  { %1539 = vadd.xlane.f32.xlu1 %v1538_v58 }
 0x5f5   :  { %v1537_v60 = vpop.xlane.xlu0 %1536 }
 0x5f9   :  { %v1531_v61 = vpop.xlane.xlu0 %1530 }
 0x5fa   :  { %5656 = vrcp.f32 %v1531_v61  ;;  %v1940_v61 = vld [vmem:[%s6639_s7 + $0x18] sm:$0xff] }
 0x5fd   :  { %v1534_v63 = vpop.xlane.xlu0 %1533 }
 0x5fe   :  { %5658 = vrcp.f32 %v1534_v63 }
 0x604   :  { %v5657_v62 = vpop.eup %5656 }
 0x605   :  { %v1552_v0 = vmul.f32 %v5657_v62, %v5647_v59  ;;  %v6150_v59 = vld [vmem:[%s6638_s10] sm:$0x3f] }
 0x607   :  { %5014 = vmatprep.mubr.msk.f32.mxu1 %vm1474_vm5, %v1552_v0 }
 0x608   :  { %v5659_v1 = vpop.eup %5658 }
 0x609   :  { %v1554_v4 = vmul.f32 %v5659_v1, %v5649_v34 }
 0x60b   :  { %5015 = vmatmul.mubr.msk.f32.vlgmr.msra.gmra.mrb[16].mxu1 %vm1474_vm5, %v1554_v4 }
 0x640   :  { %v1495_v7 = vpop.xlane.xlu1 %1494 }
 0x641   :  { %v1505_v3 = vsub.f32 %v1466_v52, %v1495_v7 }
 0x643   :  { %v1519_v6 = vmul.f32 1.442695, %v1505_v3 }
 0x644   :  { %v1498_v8 = vpop.xlane.xlu1 %1497 }
 0x645   :  { %5660 = vpow2.f32 %v1519_v6  ;;  %v1506_v10 = vsub.f32 %v1471_v53, %v1498_v8  ;;  %v1933_v6 = vsub.s32 2, %v5842_v35  ;;  %v1928_v8 = vrot.slane %v6150_v59, %v5851_v39 }
 0x646   :  { %5662 = vrcp.f32 %v1537_v60  ;;  %v1939_v60 = vld [vmem:[%s6639_s7 + $0x10] sm:$0xff] }
 0x647   :  { %v1521_v11 = vmul.f32 1.442695, %v1506_v10  ;;  %v5437_v63 = vpack.c.bf16 %v1940_v61, %v1939_v60 }
 0x648   :  { %v1528_v12 = vpop.xlane.xlu1 %1527 }
 0x649   :  { %5664 = vpow2.f32 %v1521_v11 }
 0x64a   :  { %5666 = vrcp.f32 %v1528_v12 }
 0x64c   :  { %v1540_v13 = vpop.xlane.xlu1 %1539 }
 0x64d   :  { %5668 = vrcp.f32 %v1540_v13 }
 0x64f   :  { %v5661_v14 = vpop.eup %5660 }
 0x650   :  { %v1541_v15 = vsel %vm1474_vm5, %v5661_v14, 0.0  ;;  %v5663_v18 = vpop.eup %5662 }
 0x651   :  { %1542 = vadd.xlane.f32.xlu1 %v1541_v15  ;;  %v1556_v23 = vmul.f32 %v5663_v18, %v6120_v32 }
 0x653   :  { %v5665_v20 = vpop.eup %5664 }
 0x654   :  { %v5667_v21 = vpop.eup %5666  ;;  %v1544_v31 = vsel %vm1474_vm5, %v5665_v20, 0.0 }
 0x655   :  { %v1550_v22 = vmul.f32 %v5667_v21, %v5653_v56  ;;  %1545 = vadd.xlane.f32.xlu1 %v1544_v31  ;;  %v2047_v31 = vld [vmem:[%s6640_s9] sm:$0xff] }
 0x657   :  { %5022 = vmatmul.mubr.msk.f32.vlgmr.msra.gmra.mrb[16].mxu0 %vm1474_vm5, %v1550_v22  ;;  %v5669_v24 = vpop.eup %5668  ;;  %v2048_v22 = vld [vmem:[%s6640_s9 + $0x8] sm:$0xff] }
 0x658   :  { %5428 = vmatpush3.bf16.msra.mxu0 %v6018_v2  ;;  %5028 = vmatprep.mubr.msk.f32.mxu0 %vm1474_vm5, %v1556_v23  ;;  %v1558_v25 = vmul.f32 %v5669_v24, %v5655_v57  ;;  %v1938_v57 = vld [vmem:[%s6639_s7 + $0x8] sm:$0xff]  ;;  %v2049_v23 = vld [vmem:[%s6640_s9 + $0x10] sm:$0xff]  ;;  %v5441_v24 = vpack.c.bf16 %v2048_v22, %v2047_v31  ;;  %v4487_v22 = vld [vmem:[%s6634_s6 + $0x80] sm:$0xff] }
 0x659   :  { %5430 = vmatprep.subr.bf16.mxu0 %v6031_v9  ;;  %v4472_v31 = vld [vmem:[%s6632_s2 + $0x88] sm:$0xff] }
 0x65f   :  { %5029 = vmatmul.mubr.msk.f32.vlgmr.msra.gmra.mrb[16].mxu0 %vm1474_vm5, %v1558_v25  ;;  %v2050_v25 = vld [vmem:[%s6640_s9 + $0x18] sm:$0xff] }
 0x660   :  { %5432 = vmatpush3.bf16.msra.mxu0 %v6031_v9  ;;  %v1894_v9 = vrot.slane %v6150_v59, %v5845_v37 }
 0x6de   :  { %v1543_v26 = vpop.xlane.xlu1 %1542  ;;  %v5016_v27 = vpop.f32.mrb[16].mxu1 }
 0x6df   :  { %5670 = vrcp.f32 %v1543_v26  ;;  %v1635_v28 = vpop.f32.mrb[17].mxu1  ;;  %v5445_v26 = vpack.c.bf16 %v2050_v25, %v2049_v23 }
 0x6e2   :  { %v1546_v29 = vpop.xlane.xlu1 %1545 }
 0x6e3   :  { %5672 = vrcp.f32 %v1546_v29 }
 0x6e9   :  { %v5671_v30 = vpop.eup %5670 }
 0x6ea   :  { %v1560_v32 = vmul.f32 %v5671_v30, %v5661_v14  ;;  %v1934_v14 = vrot.slane %v6150_v59, %v1933_v6  ;;  %v2053_v30 = vld [vmem:[%s6640_s9 + $0x30] sm:$0xff] }
 0x6ec   :  { %5035 = vmatprep.mubr.msk.f32.mxu0 %vm1474_vm5, %v1560_v32  ;;  %v2054_v32 = vld [vmem:[%s6640_s9 + $0x38] sm:$0xff] }
 0x6ed   :  { %v5673_v2 = vpop.eup %5672 }
 0x6ee   :  { %v1562_v5 = vmul.f32 %v5673_v2, %v5665_v20  ;;  %v5453_v2 = vpack.c.bf16 %v2054_v32, %v2053_v30  ;;  %v4490_v30 = vld [vmem:[%s6634_s6 + $0x98] sm:$0xff] }
 0x6f0   :  { %5036 = vmatmul.mubr.msk.f32.vlgmr.msra.gmra.mrb[16].mxu0 %vm1474_vm5, %v1562_v5  ;;  %v4465_v5 = vld [vmem:[%s6641_s8] ss:$0 sm:$0xff] }
 0x7c3   :  { %v5037_v33 = vpop.f32.mrb[16].mxu0 }
 0x7c4   :  { %v5625_v34 = vadd.f32 %v5037_v33, %v5016_v27  ;;  %v1880_v36 = vpop.f32.mrb[17].mxu0  ;;  %v2051_v27 = vld [vmem:[%s6640_s9 + $0x20] sm:$0xff] }
 0x7c5   :  { %v5626_v38 = vadd.f32 %v1880_v36, %v1635_v28  ;;  %v2052_v28 = vld [vmem:[%s6640_s9 + $0x28] sm:$0xff] }
 0x7c6   :  { %v1896_v41 = vadd.f32 %v5625_v34, %v1894_v9  ;;  %v5449_v29 = vpack.c.bf16 %v2052_v28, %v2051_v27  ;;  %v4474_v27 = vld [vmem:[%s6632_s2 + $0x98] sm:$0xff]  ;;  %v4489_v28 = vld [vmem:[%s6634_s6 + $0x90] sm:$0xff] }
 0x7c7   :  { %v1895_v42 = vadd.f32 %v5626_v38, %v1894_v9  ;;  %v5477_v32 = vpack.c.bf16 %v4490_v30, %v4489_v28  ;;  %v4552_v28 = vld [vmem:[%s6632_s2 + $0xf8] sm:$0xff]  ;;  %v4565_v30 = vld [vmem:[%s6634_s6 + $0xe0] sm:$0xff] }
 0x7c8   :  { %v1898_v43 = vadd.f32 %v1896_v41, %v5867_v51 }
 0x7c9   :  { %v1897_v44 = vadd.f32 %v1895_v42, %v5855_v46  ;;  %v1937_v46 = vld [vmem:[%s6639_s7] sm:$0xff] }
 0x7ca   :  { %v1902_v45 = vsel %vm47_vm0, %v1898_v43, 0.0  ;;  %v5433_v58 = vpack.c.bf16 %v1938_v57, %v1937_v46  ;;  %v2057_v57 = vsub.s32 3, %v5842_v35 }
 0x7cb   :  { %1903 = vadd.xlane.f32.xlu1 %v1902_v45  ;;  %v1899_v47 = vsel %vm47_vm0, %v1897_v44, 0.0 }
 0x7cc   :  { %1900 = vadd.xlane.f32.xlu0 %v1899_v47  ;;  %5434 = vmatprep.subr.bf16.mxu1 %v5433_v58 }
 0x7cd   :  { %5436 = vmatpush3.bf16.msra.mxu1 %v5433_v58  ;;  %v2058_v58 = vrot.slane %v6150_v59, %v2057_v57 }
 0x7ce   :  { %5438 = vmatprep.subr.bf16.mxu1 %v5437_v63 }
 0x7d1   :  { %5440 = vmatpush3.bf16.msra.mxu1 %v5437_v63 }
 0x7d2   :  { %5442 = vmatprep.subr.bf16.mxu1 %v5441_v24 }
 0x858   :  { %v1904_v48 = vpop.xlane.xlu1 %1903 }
 0x859   :  { %v1906_v49 = vmul.f32 0.03125, %v1904_v48  ;;  %v1901_v50 = vpop.xlane.xlu0 %1900 }
 0x85a   :  { %v1905_v52 = vmul.f32 0.03125, %v1901_v50 }
 0x85b   :  { %v1908_v53 = vsub.f32 %v1898_v43, %v1906_v49 }
 0x85c   :  { %v1907_v54 = vsub.f32 %v1897_v44, %v1905_v52 }
 0x85d   :  { %v1910_v55 = vmul.f32 %v1908_v53, %v1908_v53 }
 0x85e   :  { %v1909_v56 = vmul.f32 %v1907_v54, %v1907_v54 }
 0x85f   :  { %v1914_v19 = vsel %vm47_vm0, %v1910_v55, 0.0 }
 0x860   :  { %1915 = vadd.xlane.f32.xlu1 %v1914_v19  ;;  %v1911_v51 = vsel %vm47_vm0, %v1909_v56, 0.0 }
 0x861   :  { %1912 = vadd.xlane.f32.xlu0 %v1911_v51 }
 0x8ed   :  { %v1916_v62 = vpop.xlane.xlu1 %1915 }
 0x8ee   :  { %v1918_v0 = vmul.f32 0.03125, %v1916_v62  ;;  %v1913_v1 = vpop.xlane.xlu0 %1912 }
 0x8ef   :  { %v1917_v4 = vmul.f32 0.03125, %v1913_v1 }
 0x8f0   :  { %v1920_v7 = vadd.f32 1e-12, %v1918_v0 }
 0x8f1   :  { %v1919_v3 = vadd.f32 1e-12, %v1917_v4 }
 0x8f2   :  { %5674 = vrsqrt.f32 %v1920_v7 }
 0x8f3   :  { %5676 = vrsqrt.f32 %v1919_v3 }
 0x8fc   :  { %v5675_v10 = vpop.eup %5674 }
 0x8fd   :  { %v5677_v11 = vpop.eup %5676  ;;  %v1924_v12 = vmul.f32 %v5675_v10, %v1908_v53 }
 0x8fe   :  { %v1923_v13 = vmul.f32 %v5677_v11, %v1907_v54 }
 0x8ff   :  { %v1930_v15 = vmul.f32 %v1928_v8, %v1924_v12 }
 0x900   :  { %v1929_v18 = vmul.f32 %v1928_v8, %v1923_v13 }
 0x901   :  { %v1936_v21 = vadd.f32 %v1934_v14, %v1930_v15 }
 0x902   :  { %v1935_v20 = vadd.f32 %v1934_v14, %v1929_v18 }
 0x904   :  { %5046 = vmatprep.mubr.msk.f32.mxu1 %vm47_vm0, %v1935_v20 }
 0x905   :  { %5047 = vmatmul.mubr.msk.f32.vlgmr.msra.gmra.mrb[18].mxu1 %vm47_vm0, %v1936_v21 }
 0x906   :  { %5444 = vmatpush3.bf16.msra.mxu1 %v5441_v24  ;;  %v4488_v24 = vld [vmem:[%s6634_s6 + $0x88] sm:$0xff] }
 0x907   :  { %5446 = vmatprep.subr.bf16.mxu1 %v5445_v26  ;;  %v5473_v25 = vpack.c.bf16 %v4488_v24, %v4487_v22  ;;  %v4542_v22 = vld [vmem:[%s6634_s6 + $0xd8] sm:$0xff]  ;;  %v4549_v24 = vld [vmem:[%s6632_s2 + $0xe0] sm:$0xff] }
 0x90a   :  { %5448 = vmatpush3.bf16.msra.mxu1 %v5445_v26  ;;  %v4473_v26 = vld [vmem:[%s6632_s2 + $0x90] sm:$0xff] }
 0x90b   :  { %5450 = vmatprep.subr.bf16.mxu1 %v5449_v29 }
 0x90e   :  { %5452 = vmatpush3.bf16.msra.mxu1 %v5449_v29  ;;  %v5461_v29 = vpack.c.bf16 %v4474_v27, %v4473_v26  ;;  %v4551_v27 = vld [vmem:[%s6632_s2 + $0xf0] sm:$0xff] }
 0x90f   :  { %5454 = vmatprep.subr.bf16.mxu1 %v5453_v2 }
 0x912   :  { %5456 = vmatpush3.bf16.msra.mxu1 %v5453_v2  ;;  %v4479_v2 = vld [vmem:[%s6633_s4 + $0x80] sm:$0xff] }
 0x913   :  { %5474 = vmatprep.subr.bf16.mxu1 %v5473_v25 }
 0x9d8   :  { %v5048_v9 = vpop.f32.mrb[18].mxu1 }
 0x9d9   :  { %v2026_v33 = vadd.f32 %v5048_v9, %v4465_v5  ;;  %v2020_v34 = vpop.f32.mrb[19].mxu1  ;;  %v4497_v9 = vld [vmem:[%s6632_s2 + $0xa0] sm:$0xff] }
 0x9da   :  { %v2021_v36 = vadd.f32 %v4465_v5, %v2020_v34  ;;  %v4480_v5 = vld [vmem:[%s6633_s4 + $0x88] sm:$0xff] }
 0x9db   :  { %v2032_v38 = vmul.f32 0.044715, %v2026_v33  ;;  %v2030_v19 = vmul.f32 0.5, %v2026_v33  ;;  %v4498_v34 = vld [vmem:[%s6632_s2 + $0xa8] sm:$0xff] }
 0x9dc   :  { %v2031_v41 = vmul.f32 0.044715, %v2021_v36  ;;  %v2029_v55 = vmul.f32 0.5, %v2021_v36 }
 0x9dd   :  { %v2034_v42 = vmul.f32 %v2032_v38, %v2026_v33 }
 0x9de   :  { %v2033_v43 = vmul.f32 %v2031_v41, %v2021_v36 }
 0x9df   :  { %v2036_v44 = vmul.f32 %v2034_v42, %v2026_v33 }
 0x9e0   :  { %v2035_v45 = vmul.f32 %v2033_v43, %v2021_v36 }
 0x9e1   :  { %v2038_v47 = vadd.f32 %v2036_v44, %v2026_v33  ;;  %v5465_v33 = vpack.c.bf16 %v4480_v5, %v4479_v2  ;;  %v4567_v5 = vld [vmem:[%s6634_s6 + $0xf0] sm:$0xff] }
 0x9e2   :  { %v2037_v48 = vadd.f32 %v2035_v45, %v2021_v36  ;;  %v5487_v36 = vpack.c.bf16 %v4498_v34, %v4497_v9  ;;  %v4568_v9 = vld [vmem:[%s6634_s6 + $0xf8] sm:$0xff]  ;;  %v4476_v34 = vld [vmem:[%s6637_s3 + $0x4] ss:$0 sm:$0xff] }
 0x9e3   :  { %v2040_v49 = vmul.f32 0.7978846, %v2038_v47  ;;  %v2171_v47 = vsub.s32 4, %v5842_v35 }
 0x9e4   :  { %v2039_v50 = vmul.f32 0.7978846, %v2037_v48  ;;  %v2177_v48 = vsub.s32 5, %v5842_v35 }
 0x9e5   :  { %5678 = vtanh.f32 %v2040_v49  ;;  %v2172_v49 = vrot.slane %v6150_v59, %v2171_v47 }
 0x9e6   :  { %5680 = vtanh.f32 %v2039_v50 }
 0x9ef   :  { %v5679_v52 = vpop.eup %5678 }
 0x9f0   :  { %v5681_v53 = vpop.eup %5680  ;;  %v2044_v54 = vadd.f32 1.0, %v5679_v52 }
 0x9f1   :  { %v2043_v56 = vadd.f32 1.0, %v5681_v53 }
 0x9f2   :  { %v2046_v46 = vmul.f32 %v2044_v54, %v2030_v19  ;;  %v2178_v54 = vrot.slane %v6150_v59, %v2177_v48 }
 0x9f3   :  { %v2045_v51 = vmul.f32 %v2043_v56, %v2029_v55 }
 0x9f5   :  { %5065 = vmatprep.mubr.msk.f32.mxu1 %vm2059_vm6, %v2045_v51  ;;  %v4481_v51 = vld [vmem:[%s6633_s4 + $0x90] sm:$0xff] }
 0x9f6   :  { %5066 = vmatmul.mubr.msk.f32.vlgmr.msra.gmra.mrb[20].mxu1 %vm2059_vm6, %v2046_v46  ;;  %v4482_v46 = vld [vmem:[%s6633_s4 + $0x98] sm:$0xff] }
 0x9f7   :  { %5476 = vmatpush3.bf16.msra.mxu1 %v5473_v25  ;;  %v4550_v25 = vld [vmem:[%s6632_s2 + $0xe8] sm:$0xff] }
 0x9f8   :  { %5478 = vmatprep.subr.bf16.mxu1 %v5477_v32  ;;  %v5547_v26 = vpack.c.bf16 %v4550_v25, %v4549_v24 }
 0x9fb   :  { %5480 = vmatpush3.bf16.msra.mxu1 %v5477_v32  ;;  %v4566_v32 = vld [vmem:[%s6634_s6 + $0xe8] sm:$0xff] }
 0x9fc   :  { %5488 = vmatprep.subr.bf16.mxu1 %v5487_v36  ;;  %v5563_v2 = vpack.c.bf16 %v4566_v32, %v4565_v30 }
 0xac9   :  { %v5067_v60 = vpop.f32.mrb[20].mxu1 }
 0xaca   :  { %v2138_v61 = vadd.f32 %v5067_v60, %v2058_v58  ;;  %v2132_v63 = vpop.f32.mrb[21].mxu1  ;;  %v4500_v60 = vld [vmem:[%s6632_s2 + $0xb8] sm:$0xff] }
 0xacb   :  { %v2133_v62 = vadd.f32 %v2132_v63, %v2058_v58  ;;  %v4499_v58 = vld [vmem:[%s6632_s2 + $0xb0] sm:$0xff]  ;;  %v5469_v63 = vpack.c.bf16 %v4482_v46, %v4481_v51  ;;  %v4506_v51 = vld [vmem:[%s6633_s4 + $0xa8] sm:$0xff] }
 0xacc   :  { %v2142_v0 = vadd.f32 %v2138_v61, %v1936_v21 }
 0xacd   :  { %v2141_v1 = vadd.f32 %v2133_v62, %v1935_v20  ;;  %v4471_v20 = vld [vmem:[%s6632_s2 + $0x80] sm:$0xff]  ;;  %v5491_v62 = vpack.c.bf16 %v4500_v60, %v4499_v58 }
 0xace   :  { %v2146_v4 = vsel %vm47_vm0, %v2142_v0, 0.0  ;;  %v5457_v23 = vpack.c.bf16 %v4472_v31, %v4471_v20  ;;  %v4541_v31 = vld [vmem:[%s6634_s6 + $0xd0] sm:$0xff] }
 0xacf   :  { %2147 = vadd.xlane.f32.xlu1 %v2146_v4  ;;  %v2143_v7 = vsel %vm47_vm0, %v2141_v1, 0.0 }
 0xad0   :  { %2144 = vadd.xlane.f32.xlu0 %v2143_v7  ;;  %5458 = vmatprep.subr.bf16.mxu0 %v5457_v23  ;;  %v4515_v7 = vld [vmem:[%s6634_s6 + $0xb0] sm:$0xff] }
 0xad1   :  { %5460 = vmatpush3.bf16.msra.mxu0 %v5457_v23  ;;  %v5537_v23 = vpack.c.bf16 %v4542_v22, %v4541_v31 }
 0xad2   :  { %5462 = vmatprep.subr.bf16.mxu0 %v5461_v29 }
 0xad5   :  { %5464 = vmatpush3.bf16.msra.mxu0 %v5461_v29  ;;  %v5551_v29 = vpack.c.bf16 %v4552_v28, %v4551_v27  ;;  %v4510_v28 = vld [vmem:[%s6636_s5 + $0x5] ss:$0 sm:$0xff] }
 0xad6   :  { %5466 = vmatprep.subr.bf16.mxu0 %v5465_v33 }
 0xb5c   :  { %v2148_v3 = vpop.xlane.xlu1 %2147 }
 0xb5d   :  { %v2150_v8 = vmul.f32 0.03125, %v2148_v3  ;;  %v2145_v10 = vpop.xlane.xlu0 %2144  ;;  %v4516_v3 = vld [vmem:[%s6634_s6 + $0xb8] sm:$0xff] }
 0xb5e   :  { %v2149_v11 = vmul.f32 0.03125, %v2145_v10  ;;  %v4523_v10 = vld [vmem:[%s6632_s2 + $0xc0] sm:$0xff] }
 0xb5f   :  { %v2152_v12 = vsub.f32 %v2142_v0, %v2150_v8  ;;  %v4513_v0 = vld [vmem:[%s6634_s6 + $0xa0] sm:$0xff]  ;;  %v5507_v8 = vpack.c.bf16 %v4516_v3, %v4515_v7 }
 0xb60   :  { %v2151_v13 = vsub.f32 %v2141_v1, %v2149_v11  ;;  %v4514_v1 = vld [vmem:[%s6634_s6 + $0xa8] sm:$0xff] }
 0xb61   :  { %v2154_v14 = vmul.f32 %v2152_v12, %v2152_v12  ;;  %v5503_v4 = vpack.c.bf16 %v4514_v1, %v4513_v0  ;;  %v4524_v11 = vld [vmem:[%s6632_s2 + $0xc8] sm:$0xff]  ;;  %v4507_v0 = vld [vmem:[%s6633_s4 + $0xb0] sm:$0xff]  ;;  %v4508_v1 = vld [vmem:[%s6633_s4 + $0xb8] sm:$0xff] }
 0xb62   :  { %v2153_v15 = vmul.f32 %v2151_v13, %v2151_v13  ;;  %v5499_v3 = vpack.c.bf16 %v4508_v1, %v4507_v0 }
 0xb63   :  { %v2158_v18 = vsel %vm47_vm0, %v2154_v14, 0.0  ;;  %v4526_v14 = vld [vmem:[%s6632_s2 + $0xd8] sm:$0xff] }
 0xb64   :  { %2159 = vadd.xlane.f32.xlu1 %v2158_v18  ;;  %v2155_v21 = vsel %vm47_vm0, %v2153_v15, 0.0  ;;  %v4539_v18 = vld [vmem:[%s6634_s6 + $0xc0] sm:$0xff] }
 0xb65   :  { %2156 = vadd.xlane.f32.xlu0 %v2155_v21  ;;  %v4540_v21 = vld [vmem:[%s6634_s6 + $0xc8] sm:$0xff] }
 0xb66   :  { %v5533_v20 = vpack.c.bf16 %v4540_v21, %v4539_v18  ;;  %v6418_v21 = vld [vmem:[%s6637_s3 + $0x7] ss:$0 sm:$0xff] }
 0xbf1   :  { %v2160_v38 = vpop.xlane.xlu1 %2159 }
 0xbf2   :  { %v2162_v41 = vmul.f32 0.03125, %v2160_v38  ;;  %v2157_v42 = vpop.xlane.xlu0 %2156 }
 0xbf3   :  { %v2161_v43 = vmul.f32 0.03125, %v2157_v42 }
 0xbf4   :  { %v2164_v44 = vadd.f32 1e-12, %v2162_v41 }
 0xbf5   :  { %v2163_v45 = vadd.f32 1e-12, %v2161_v43 }
 0xbf6   :  { %5682 = vrsqrt.f32 %v2164_v44 }
 0xbf7   :  { %5684 = vrsqrt.f32 %v2163_v45  ;;  %v4484_v45 = vld [vmem:[%s6636_s5 + $0x4] ss:$0 sm:$0xff] }
 0xc00   :  { %v5683_v50 = vpop.eup %5682 }
 0xc01   :  { %v5685_v52 = vpop.eup %5684  ;;  %v2168_v53 = vmul.f32 %v5683_v50, %v2152_v12  ;;  %v5517_v12 = vpack.c.bf16 %v4524_v11, %v4523_v10 }
 0xc02   :  { %v2167_v55 = vmul.f32 %v5685_v52, %v2151_v13  ;;  %v4525_v13 = vld [vmem:[%s6632_s2 + $0xd0] sm:$0xff] }
 0xc03   :  { %v2174_v56 = vmul.f32 %v2172_v49, %v2168_v53  ;;  %v5521_v15 = vpack.c.bf16 %v4526_v14, %v4525_v13 }
 0xc04   :  { %v2173_v19 = vmul.f32 %v2172_v49, %v2167_v55  ;;  %v4502_v49 = vld [vmem:[%s6637_s3 + $0x5] ss:$0 sm:$0xff] }
 0xc05   :  { %v6275_v61 = vadd.f32 %v2178_v54, %v2174_v56 }
 0xc06   :  { %v6273_v59 = vadd.f32 %v2178_v54, %v2173_v19  ;;  %v4505_v19 = vld [vmem:[%s6633_s4 + $0xa0] sm:$0xff] }
 0xc07   :  { %v5495_v60 = vpack.c.bf16 %v4506_v51, %v4505_v19 }
 0xc08   :  { %5076 = vmatprep.mubr.msk.f32.mxu0 %vm47_vm0, %v6273_v59  ;;  %5098 = vmatprep.mubr.msk.f32.mxu1 %vm47_vm0, %v6273_v59 }
 0xc09   :  { %5077 = vmatmul.mubr.msk.f32.vlgmr.msra.gmra.mrb[18].mxu0 %vm47_vm0, %v6275_v61  ;;  %5099 = vmatmul.mubr.msk.f32.vlgmr.msra.gmra.mrb[22].mxu1 %vm47_vm0, %v6275_v61 }
 0xc0a   :  { %5468 = vmatpush3.bf16.msra.mxu0 %v5465_v33  ;;  %5490 = vmatpush3.bf16.msra.mxu1 %v5487_v36  ;;  %v5567_v33 = vpack.c.bf16 %v4568_v9, %v4567_v5  ;;  %v4532_v5 = vld [vmem:[%s6633_s4 + $0xc8] sm:$0xff] }
 0xc0b   :  { %5087 = vmatprep.mubr.msk.f32.mxu0 %vm47_vm0, %v6273_v59  ;;  %5116 = vmatprep.mubr.msk.f32.mxu1 %vm47_vm0, %v6273_v59 }
 0xc0c   :  { %5470 = vmatprep.subr.bf16.mxu0 %v5469_v63  ;;  %5492 = vmatprep.subr.bf16.mxu1 %v5491_v62 }
 0xc0e   :  { %5472 = vmatpush3.bf16.msra.mxu0 %v5469_v63  ;;  %5494 = vmatpush3.bf16.msra.mxu1 %v5491_v62 }
 0xc0f   :  { %5504 = vmatprep.subr.bf16.mxu1 %v5503_v4 }
 0xc11   :  { %5088 = vmatmul.mubr.msk.f32.vlgmr.msra.gmra.mrb[20].mxu0 %vm47_vm0, %v6275_v61  ;;  %5117 = vmatmul.mubr.msk.f32.vlgmr.msra.gmra.mrb[24].mxu1 %vm47_vm0, %v6275_v61 }
 0xc12   :  { %5506 = vmatpush3.bf16.msra.mxu1 %v5503_v4  ;;  %5138 = vmatprep.mubr.msk.f32.mxu1 %vm47_vm0, %v6273_v59 }
 0xc13   :  { %5508 = vmatprep.subr.bf16.mxu1 %v5507_v8 }
 0xc16   :  { %5510 = vmatpush3.bf16.msra.mxu1 %v5507_v8  ;;  %v4528_v8 = vld [vmem:[%s6637_s3 + $0x6] ss:$0 sm:$0xff] }
 0xc17   :  { %5518 = vmatprep.subr.bf16.mxu1 %v5517_v12 }
 0xc19   :  { %5139 = vmatmul.mubr.msk.f32.vlgmr.msra.gmra.mrb[26].mxu1 %vm47_vm0, %v6275_v61 }
 0xc1a   :  { %5520 = vmatpush3.bf16.msra.mxu1 %v5517_v12  ;;  %5156 = vmatprep.mubr.msk.f32.mxu1 %vm47_vm0, %v6273_v59 }
 0xc1b   :  { %5522 = vmatprep.subr.bf16.mxu1 %v5521_v15 }
 0xc1e   :  { %5524 = vmatpush3.bf16.msra.mxu1 %v5521_v15 }
 0xc1f   :  { %5534 = vmatprep.subr.bf16.mxu1 %v5533_v20 }
 0xc21   :  { %5157 = vmatmul.mubr.msk.f32.vlgmr.msra.gmra.mrb[28].mxu1 %vm47_vm0, %v6275_v61 }
 0xc22   :  { %5536 = vmatpush3.bf16.msra.mxu1 %v5533_v20  ;;  %5178 = vmatprep.mubr.msk.f32.mxu1 %vm47_vm0, %v6273_v59 }
 0xc23   :  { %5538 = vmatprep.subr.bf16.mxu1 %v5537_v23 }
 0xc26   :  { %5540 = vmatpush3.bf16.msra.mxu1 %v5537_v23 }
 0xc27   :  { %5548 = vmatprep.subr.bf16.mxu1 %v5547_v26 }
 0xc29   :  { %5179 = vmatmul.mubr.msk.f32.vlgmr.msra.gmra.mrb[30].mxu1 %vm47_vm0, %v6275_v61 }
 0xc2a   :  { %5550 = vmatpush3.bf16.msra.mxu1 %v5547_v26  ;;  %5196 = vmatprep.mubr.msk.f32.mxu1 %vm47_vm0, %v6273_v59 }
 0xc2b   :  { %5552 = vmatprep.subr.bf16.mxu1 %v5551_v29 }
 0xc2e   :  { %5554 = vmatpush3.bf16.msra.mxu1 %v5551_v29 }
 0xc2f   :  { %5564 = vmatprep.subr.bf16.mxu1 %v5563_v2 }
 0xc31   :  { %5197 = vmatmul.mubr.msk.f32.vlgmr.msra.gmra.mrb[32].mxu1 %vm47_vm0, %v6275_v61 }
 0xc32   :  { %5566 = vmatpush3.bf16.msra.mxu1 %v5563_v2  ;;  %5218 = vmatprep.mubr.msk.f32.mxu1 %vm47_vm0, %v6273_v59  ;;  %v4531_v2 = vld [vmem:[%s6633_s4 + $0xc0] sm:$0xff] }
 0xc33   :  { %5568 = vmatprep.subr.bf16.mxu1 %v5567_v33 }
 0xc36   :  { %5570 = vmatpush3.bf16.msra.mxu1 %v5567_v33 }
 0xc39   :  { %5219 = vmatmul.mubr.msk.f32.vlgmr.msra.gmra.mrb[34].mxu1 %vm47_vm0, %v6275_v61 }
 0xcdc   :  { %v5078_v36 = vpop.f32.mrb[18].mxu0  ;;  %v5100_v38 = vpop.f32.mrb[22].mxu1 }
 0xcdd   :  { %v2268_v41 = vpop.f32.mrb[19].mxu0  ;;  %v2436_v42 = vpop.f32.mrb[23].mxu1  ;;  %v2274_v7 = vadd.f32 %v5078_v36, %v4476_v34  ;;  %v4533_v36 = vld [vmem:[%s6633_s4 + $0xd0] sm:$0xff] }
 0xcde   :  { %v2269_v43 = vadd.f32 %v4476_v34, %v2268_v41  ;;  %v6376_v44 = vpack.c.bf16 %v5100_v38, %v2436_v42  ;;  %v5525_v34 = vpack.c.bf16 %v4532_v5, %v4531_v2  ;;  %v4534_v38 = vld [vmem:[%s6633_s4 + $0xd8] sm:$0xff] }
 0xcdf   :  { %v5529_v41 = vpack.c.bf16 %v4534_v38, %v4533_v36 }
 0xce0   :  { %5105 = vmatprep.mubr.msk.f32.mxu0 %vm357_vm1, %v2269_v43 }
 0xce4   :  { %v5089_v50 = vpop.f32.mrb[20].mxu0  ;;  %v5118_v52 = vpop.f32.mrb[24].mxu1 }
 0xce5   :  { %v2362_v53 = vadd.f32 %v5089_v50, %v4484_v45  ;;  %v2617_v54 = vadd.f32 %v5118_v52, %v4502_v49  ;;  %v2356_v55 = vpop.f32.mrb[21].mxu0  ;;  %v2611_v56 = vpop.f32.mrb[25].mxu1 }
 0xce6   :  { %v2357_v46 = vadd.f32 %v4484_v45, %v2356_v55  ;;  %v2612_v13 = vadd.f32 %v4502_v49, %v2611_v56  ;;  %v4536_v56 = vld [vmem:[%s6636_s5 + $0x6] ss:$0 sm:$0xff] }
 0xce8   :  { %v5481_v58 = vpack.c.bf16 %v2362_v53, %v2357_v46 }
 0xcea   :  { %5483 = vmatprep.subr.msk.bf16.mxu0 %vm5987_vm2, %v5481_v58 }
 0xceb   :  { %5486 = vmatpush3.bf16.xpose.msk.msra.mxu0 %vm5987_vm2, %v5481_v58 }
 0xcec   :  { %v5140_v63 = vpop.f32.mrb[26].mxu1  ;;  %5496 = vmatprep.subr.bf16.mxu0 %v5495_v60 }
 0xced   :  { %v2779_v62 = vpop.f32.mrb[27].mxu1 }
 0xcee   :  { %v5577_v4 = vpack.c.bf16 %v5140_v63, %v2779_v62  ;;  %v4557_v63 = vld [vmem:[%s6633_s4 + $0xe0] sm:$0xff]  ;;  %v4558_v62 = vld [vmem:[%s6633_s4 + $0xe8] sm:$0xff] }
 0xcf0   :  { %5578 = vmatprep.subr.bf16.mxu1 %v5577_v4 }
 0xcf1   :  { %5580 = vmatpush3.bf16.msra.mxu1 %v5577_v4  ;;  %v5555_v4 = vpack.c.bf16 %v4558_v62, %v4557_v63 }
 0xcf2   :  { %5106 = vmatmul.mubr.msk.f32.vlgmr.msra.gmra.mrb[22].mxu0 %vm357_vm1, %v2274_v7  ;;  %5582 = vmatprep.subr.bf16.mxu1 %v6376_v44  ;;  %v4559_v7 = vld [vmem:[%s6633_s4 + $0xf0] sm:$0xff] }
 0xcf3   :  { %5498 = vmatpush3.bf16.msra.mxu0 %v5495_v60  ;;  %5127 = vmatprep.mubr.msk.f32.mxu0 %vm47_vm0, %v6273_v59 }
 0xcf4   :  { %v5158_v10 = vpop.f32.mrb[28].mxu1  ;;  %5500 = vmatprep.subr.bf16.mxu0 %v5499_v3 }
 0xcf5   :  { %v6408_v11 = vadd.f32 %v5158_v10, %v4528_v8  ;;  %v2954_v12 = vpop.f32.mrb[29].mxu1 }
 0xcf6   :  { %v2955_v42 = vadd.f32 %v4528_v8, %v2954_v12 }
 0xcf7   :  { %5502 = vmatpush3.bf16.msra.mxu0 %v5499_v3  ;;  %v4560_v3 = vld [vmem:[%s6633_s4 + $0xf8] sm:$0xff] }
 0xcf8   :  { %v5559_v8 = vpack.c.bf16 %v4560_v3, %v4559_v7 }
 0xcfa   :  { %5128 = vmatmul.mubr.msk.f32.vlgmr.msra.gmra.mrb[24].mxu0 %vm47_vm0, %v6275_v61 }
 0xcfb   :  { %5145 = vmatprep.mubr.msk.f32.mxu0 %vm357_vm1, %v2612_v13 }
 0xcfc   :  { %v5180_v14 = vpop.f32.mrb[30].mxu1 }
 0xcfd   :  { %v3122_v15 = vpop.f32.mrb[31].mxu1 }
 0xcfe   :  { %v6413_v18 = vpack.c.bf16 %v5180_v14, %v3122_v15 }
 0xd04   :  { %v5198_v20 = vpop.f32.mrb[32].mxu1 }
 0xd05   :  { %v6421_v31 = vadd.f32 %v5198_v20, %v6418_v21  ;;  %v6423_v22 = vpop.f32.mrb[33].mxu1 }
 0xd06   :  { %v3298_v10 = vadd.f32 %v6418_v21, %v6423_v22  ;;  %v4562_v21 = vld [vmem:[%s6636_s5 + $0x7] ss:$0 sm:$0xff] }
 0xd0c   :  { %v5220_v23 = vpop.f32.mrb[34].mxu1 }
 0xd0d   :  { %v3465_v24 = vpop.f32.mrb[35].mxu1 }
 0xd0e   :  { %v6425_v25 = vpack.c.bf16 %v5220_v23, %v3465_v24 }
 0xdc5   :  { %v5107_v26 = vpop.f32.mrb[22].mxu0 }
 0xdc6   :  { %v2523_v27 = vpop.f32.mrb[23].mxu0  ;;  %v6455_v52 = vadd.f32 %v5107_v26, %v6036_v16 }
 0xdc8   :  { %v3564_v19 = vsel %vm1474_vm5, %v6455_v52, -inf }
 0xdcd   :  { %v5129_v29 = vpop.f32.mrb[24].mxu0 }
 0xdce   :  { %v2705_v30 = vadd.f32 %v5129_v29, %v4510_v28  ;;  %v2699_v32 = vpop.f32.mrb[25].mxu0 }
 0xdcf   :  { %v2700_v9 = vadd.f32 %v4510_v28, %v2699_v32 }
 0xdd1   :  { %v5511_v33 = vpack.c.bf16 %v2705_v30, %v2700_v9 }
 0xdd3   :  { %5513 = vmatprep.subr.msk.bf16.mxu0 %vm5987_vm2, %v5511_v33 }
 0xdd4   :  { %5516 = vmatpush3.bf16.xpose.msk.msra.mxu0 %vm5987_vm2, %v5511_v33 }
 0xdd5   :  { %5526 = vmatprep.subr.bf16.mxu0 %v5525_v34 }
 0xddb   :  { %5146 = vmatmul.mubr.msk.f32.vlgmr.msra.gmra.mrb[26].mxu0 %vm357_vm1, %v2617_v54  ;;  %v6459_v54 = vadd.f32 %v2523_v27, %v6038_v17 }
 0xddc   :  { %5528 = vmatpush3.bf16.msra.mxu0 %v5525_v34  ;;  %5167 = vmatprep.mubr.msk.f32.mxu0 %vm47_vm0, %v6273_v59 }
 0xddd   :  { %5530 = vmatprep.subr.bf16.mxu0 %v5529_v41  ;;  %v3561_v46 = vsel %vm1474_vm5, %v6459_v54, -inf }
 0xde0   :  { %5532 = vmatpush3.bf16.msra.mxu0 %v5529_v41 }
 0xde3   :  { %5168 = vmatmul.mubr.msk.f32.vlgmr.msra.gmra.mrb[28].mxu0 %vm47_vm0, %v6275_v61 }
 0xde4   :  { %5185 = vmatprep.mubr.msk.f32.mxu0 %vm357_vm1, %v2955_v42 }
 0xeae   :  { %v5147_v43 = vpop.f32.mrb[26].mxu0 }
 0xeaf   :  { %v2872_v45 = vadd.f32 %v5147_v43, %v6036_v16  ;;  %v2866_v49 = vpop.f32.mrb[27].mxu0 }
 0xeb0   :  { %v2867_v50 = vadd.f32 %v2866_v49, %v6038_v17 }
 0xeb1   :  { %v3570_v53 = vsel %vm1474_vm5, %v2872_v45, -inf }
 0xeb2   :  { %3571 = vmax.xlane.f32.xlu1 %v3570_v53  ;;  %v3567_v55 = vsel %vm1474_vm5, %v2867_v50, -inf }
 0xeb3   :  { %3568 = vmax.xlane.f32.xlu0 %v3567_v55 }
 0xeb6   :  { %3565 = vmax.xlane.f32.xlu1 %v3564_v19  ;;  %v5169_v51 = vpop.f32.mrb[28].mxu0 }
 0xeb7   :  { %v3048_v58 = vadd.f32 %v5169_v51, %v4536_v56  ;;  %v3042_v60 = vpop.f32.mrb[29].mxu0  ;;  %3562 = vmax.xlane.f32.xlu0 %v3561_v46 }
 0xeb8   :  { %v3043_v0 = vadd.f32 %v4536_v56, %v3042_v60 }
 0xeba   :  { %v5541_v1 = vpack.c.bf16 %v3048_v58, %v3043_v0 }
 0xebc   :  { %5543 = vmatprep.subr.msk.bf16.mxu0 %vm5987_vm2, %v5541_v1 }
 0xebd   :  { %5546 = vmatpush3.bf16.xpose.msk.msra.mxu0 %vm5987_vm2, %v5541_v1 }
 0xebe   :  { %5556 = vmatprep.subr.bf16.mxu0 %v5555_v4 }
 0xec4   :  { %5186 = vmatmul.mubr.msk.f32.vlgmr.msra.gmra.mrb[30].mxu0 %vm357_vm1, %v6408_v11 }
 0xec5   :  { %5558 = vmatpush3.bf16.msra.mxu0 %v5555_v4  ;;  %5207 = vmatprep.mubr.msk.f32.mxu0 %vm47_vm0, %v6273_v59 }
 0xec6   :  { %5560 = vmatprep.subr.bf16.mxu0 %v5559_v8 }
 0xec9   :  { %5562 = vmatpush3.bf16.msra.mxu0 %v5559_v8 }
 0xecc   :  { %5208 = vmatmul.mubr.msk.f32.vlgmr.msra.gmra.mrb[32].mxu0 %vm47_vm0, %v6275_v61 }
 0xecd   :  { %5225 = vmatprep.mubr.msk.f32.mxu0 %vm357_vm1, %v3298_v10 }
 0xf3f   :  { %v3572_v28 = vpop.xlane.xlu1 %3571 }
 0xf40   :  { %v3569_v29 = vpop.xlane.xlu0 %3568  ;;  %v3588_v30 = vsub.f32 %v2872_v45, %v3572_v28 }
 0xf41   :  { %v3587_v32 = vsub.f32 %v2867_v50, %v3569_v29 }
 0xf42   :  { %v3599_v9 = vmul.f32 1.442695, %v3588_v30 }
 0xf43   :  { %v3566_v2 = vpop.xlane.xlu1 %3565  ;;  %v3597_v34 = vmul.f32 1.442695, %v3587_v32 }
 0xf44   :  { %v3563_v5 = vpop.xlane.xlu0 %3562  ;;  %v3586_v33 = vsub.f32 %v6455_v52, %v3566_v2  ;;  %5686 = vpow2.f32 %v3599_v9 }
 0xf45   :  { %v3585_v36 = vsub.f32 %v6459_v54, %v3563_v5  ;;  %5688 = vpow2.f32 %v3597_v34 }
 0xf46   :  { %v3595_v40 = vmul.f32 1.442695, %v3586_v33 }
 0xf47   :  { %v3593_v43 = vmul.f32 1.442695, %v3585_v36 }
 0xf48   :  { %5690 = vpow2.f32 %v3595_v40 }
 0xf49   :  { %5692 = vpow2.f32 %v3593_v43 }
 0xf4e   :  { %v5687_v56 = vpop.eup %5686 }
 0xf4f   :  { %v5689_v51 = vpop.eup %5688  ;;  %v3618_v46 = vsel %vm1474_vm5, %v5687_v56, 0.0 }
 0xf50   :  { %v3615_v60 = vsel %vm1474_vm5, %v5689_v51, 0.0 }
 0xf52   :  { %v5691_v58 = vpop.eup %5690 }
 0xf53   :  { %v3612_v63 = vsel %vm1474_vm5, %v5691_v58, 0.0 }
 0xf97   :  { %v5187_v12 = vpop.f32.mrb[30].mxu0 }
 0xf98   :  { %v3215_v13 = vadd.f32 %v5187_v12, %v6036_v16  ;;  %v3209_v14 = vpop.f32.mrb[31].mxu0 }
 0xf99   :  { %v3210_v11 = vadd.f32 %v3209_v14, %v6038_v17 }
 0xf9a   :  { %v3576_v15 = vsel %vm1474_vm5, %v3215_v13, -inf }
 0xf9b   :  { %3577 = vmax.xlane.f32.xlu1 %v3576_v15  ;;  %v3573_v20 = vsel %vm1474_vm5, %v3210_v11, -inf }
 0xf9c   :  { %3574 = vmax.xlane.f32.xlu0 %v3573_v20 }
 0xf9f   :  { %v5209_v22 = vpop.f32.mrb[32].mxu0 }
 0xfa0   :  { %v3391_v23 = vadd.f32 %v5209_v22, %v4562_v21  ;;  %v3385_v24 = vpop.f32.mrb[33].mxu0 }
 0xfa1   :  { %v3386_v26 = vadd.f32 %v4562_v21, %v3385_v24 }
 0xfa3   :  { %v5571_v27 = vpack.c.bf16 %v3391_v23, %v3386_v26 }
 0xfa5   :  { %5573 = vmatprep.subr.msk.bf16.mxu0 %vm5987_vm2, %v5571_v27 }
 0xfa6   :  { %5576 = vmatpush3.bf16.xpose.msk.msra.mxu0 %vm5987_vm2, %v5571_v27 }
 0xfad   :  { %5226 = vmatmul.mubr.msk.f32.vlgmr.msra.gmra.mrb[34].mxu0 %vm357_vm1, %v6421_v31 }
0x1028   :  { %v3578_v38 = vpop.xlane.xlu1 %3577 }
0x1029   :  { %v3575_v41 = vpop.xlane.xlu0 %3574  ;;  %v3590_v42 = vsub.f32 %v3215_v13, %v3578_v38 }
0x102a   :  { %v3589_v31 = vsub.f32 %v3210_v11, %v3575_v41 }
0x102b   :  { %v3603_v49 = vmul.f32 1.442695, %v3590_v42 }
0x102c   :  { %v3601_v45 = vmul.f32 1.442695, %v3589_v31 }
0x102d   :  { %5694 = vpow2.f32 %v3603_v49 }
0x102e   :  { %5696 = vpow2.f32 %v3601_v45 }
0x1080   :  { %v5227_v50 = vpop.f32.mrb[34].mxu0 }
0x1081   :  { %v3558_v53 = vadd.f32 %v5227_v50, %v6036_v16  ;;  %v3552_v55 = vpop.f32.mrb[35].mxu0  ;;  %v5693_v16 = vpop.eup %5692 }
0x1082   :  { %v3553_v52 = vadd.f32 %v3552_v55, %v6038_v17  ;;  %v5695_v17 = vpop.eup %5694  ;;  %v3609_v62 = vsel %vm1474_vm5, %v5693_v16, 0.0 }
0x1083   :  { %v3582_v54 = vsel %vm1474_vm5, %v3558_v53, -inf  ;;  %v5697_v0 = vpop.eup %5696  ;;  %v3624_v1 = vsel %vm1474_vm5, %v5695_v17, 0.0 }
0x1084   :  { %3583 = vmax.xlane.f32.xlu1 %v3582_v54  ;;  %v3579_v19 = vsel %vm1474_vm5, %v3553_v52, -inf  ;;  %v3621_v4 = vsel %vm1474_vm5, %v5697_v0, 0.0 }
0x1085   :  { %3580 = vmax.xlane.f32.xlu0 %v3579_v19 }
0x1088   :  { %3619 = vadd.xlane.f32.xlu1 %v3618_v46 }
0x1089   :  { %3616 = vadd.xlane.f32.xlu0 %v3615_v60 }
0x108c   :  { %3613 = vadd.xlane.f32.xlu1 %v3612_v63 }
0x108d   :  { %3610 = vadd.xlane.f32.xlu0 %v3609_v62 }
0x1090   :  { %3625 = vadd.xlane.f32.xlu1 %v3624_v1  ;;  %v4585_v1 = vld [vmem:[%s6639_s7 + $0x30] sm:$0xff] }
0x1091   :  { %3622 = vadd.xlane.f32.xlu0 %v3621_v4 }
0x1111   :  { %v3584_v7 = vpop.xlane.xlu1 %3583 }
0x1112   :  { %v3592_v3 = vsub.f32 %v3558_v53, %v3584_v7  ;;  %v3581_v8 = vpop.xlane.xlu0 %3580  ;;  %v4586_v7 = vld [vmem:[%s6639_s7 + $0x38] sm:$0xff] }
0x1113   :  { %v3591_v10 = vsub.f32 %v3553_v52, %v3581_v8 }
0x1114   :  { %v3607_v12 = vmul.f32 1.442695, %v3592_v3  ;;  %v5597_v3 = vpack.c.bf16 %v4586_v7, %v4585_v1 }
0x1115   :  { %v3605_v13 = vmul.f32 1.442695, %v3591_v10  ;;  %v3620_v14 = vpop.xlane.xlu1 %3619 }
0x1116   :  { %5698 = vpow2.f32 %v3607_v12  ;;  %v3617_v11 = vpop.xlane.xlu0 %3616 }
0x1117   :  { %5700 = vpow2.f32 %v3605_v13 }
0x1118   :  { %5702 = vrcp.f32 %v3620_v14 }
0x1119   :  { %5704 = vrcp.f32 %v3617_v11  ;;  %v3614_v20 = vpop.xlane.xlu1 %3613 }
0x111a   :  { %v3611_v15 = vpop.xlane.xlu0 %3610 }
0x111b   :  { %5706 = vrcp.f32 %v3611_v15 }
0x111c   :  { %5708 = vrcp.f32 %v3614_v20 }
0x111d   :  { %v3626_v2 = vpop.xlane.xlu1 %3625 }
0x111e   :  { %v3623_v21 = vpop.xlane.xlu0 %3622 }
0x111f   :  { %5710 = vrcp.f32 %v3623_v21 }
0x1120   :  { %v5699_v22 = vpop.eup %5698  ;;  %5712 = vrcp.f32 %v3626_v2  ;;  %v4594_v2 = vld [vmem:[%s6640_s9 + $0x58] sm:$0xff] }
0x1121   :  { %v5701_v23 = vpop.eup %5700  ;;  %v3630_v24 = vsel %vm1474_vm5, %v5699_v22, 0.0 }
0x1122   :  { %v5703_v26 = vpop.eup %5702  ;;  %3631 = vadd.xlane.f32.xlu1 %v3630_v24  ;;  %v3627_v27 = vsel %vm1474_vm5, %v5701_v23, 0.0 }
0x1123   :  { %v5705_v28 = vpop.eup %5704  ;;  %3628 = vadd.xlane.f32.xlu0 %v3627_v27  ;;  %v3640_v32 = vmul.f32 %v5703_v26, %v5687_v56 }
0x1124   :  { %v3638_v29 = vmul.f32 %v5705_v28, %v5689_v51 }
0x1125   :  { %v5707_v30 = vpop.eup %5706 }
0x1126   :  { %5232 = vmatprep.mubr.msk.f32.mxu1 %vm1474_vm5, %v3638_v29  ;;  %v3634_v5 = vmul.f32 %v5707_v30, %v5693_v16  ;;  %v5709_v9 = vpop.eup %5708  ;;  %v4592_v30 = vld [vmem:[%s6640_s9 + $0x48] sm:$0xff] }
0x1127   :  { %5233 = vmatmul.mubr.msk.f32.vlgmr.msra.gmra.mrb[36].mxu1 %vm1474_vm5, %v3640_v32  ;;  %v3636_v34 = vmul.f32 %v5709_v9, %v5691_v58  ;;  %v4595_v9 = vld [vmem:[%s6640_s9 + $0x60] sm:$0xff] }
0x1128   :  { %5584 = vmatpush3.bf16.msra.mxu1 %v6376_v44  ;;  %5239 = vmatprep.mubr.msk.f32.mxu1 %vm1474_vm5, %v3634_v5 }
0x1129   :  { %5586 = vmatprep.subr.bf16.mxu1 %v6413_v18  ;;  %v5711_v33 = vpop.eup %5710 }
0x112a   :  { %v3642_v36 = vmul.f32 %v5711_v33, %v5697_v0  ;;  %v5713_v38 = vpop.eup %5712  ;;  %v4584_v0 = vld [vmem:[%s6639_s7 + $0x28] sm:$0xff] }
0x112b   :  { %v3644_v41 = vmul.f32 %v5713_v38, %v5695_v17  ;;  %v4596_v33 = vld [vmem:[%s6640_s9 + $0x68] sm:$0xff]  ;;  %v4598_v38 = vld [vmem:[%s6640_s9 + $0x78] sm:$0xff] }
0x112f   :  { %5240 = vmatmul.mubr.msk.f32.vlgmr.msra.gmra.mrb[36].mxu1 %vm1474_vm5, %v3636_v34  ;;  %v5609_v34 = vpack.c.bf16 %v4596_v33, %v4595_v9 }
0x1130   :  { %5588 = vmatpush3.bf16.msra.mxu1 %v6413_v18  ;;  %5246 = vmatprep.mubr.msk.f32.mxu1 %vm1474_vm5, %v3642_v36  ;;  %v6537_v18 = vld [vmem:[%s6638_s10 + $0x8] sm:$0x3f]  ;;  %v4597_v36 = vld [vmem:[%s6640_s9 + $0x70] sm:$0xff] }
0x1131   :  { %5590 = vmatprep.subr.bf16.mxu1 %v6425_v25  ;;  %v4014_v15 = vrot.slane %v6537_v18, %v5851_v39  ;;  %v4020_v24 = vrot.slane %v6537_v18, %v1933_v6  ;;  %v4591_v39 = vld [vmem:[%s6640_s9 + $0x40] sm:$0xff]  ;;  %v4593_v6 = vld [vmem:[%s6640_s9 + $0x50] sm:$0xff]  ;;  %v4260_v9 = vrot.slane %v6537_v18, %v2171_v47 }
0x1132   :  { %v5601_v32 = vpack.c.bf16 %v4592_v30, %v4591_v39  ;;  %v5605_v5 = vpack.c.bf16 %v4594_v2, %v4593_v6  ;;  %v4601_v47 = vld [vmem:[%s6643_s12] ss:$0 sm:$0xff] }
0x1137   :  { %5247 = vmatmul.mubr.msk.f32.vlgmr.msra.gmra.mrb[36].mxu1 %vm1474_vm5, %v3644_v41  ;;  %v5613_v41 = vpack.c.bf16 %v4598_v38, %v4597_v36 }
0x1138   :  { %5592 = vmatpush3.bf16.msra.mxu1 %v6425_v25  ;;  %v3980_v25 = vrot.slane %v6537_v18, %v5845_v37 }
0x11af   :  { %v3632_v44 = vpop.xlane.xlu1 %3631 }
0x11b0   :  { %5714 = vrcp.f32 %v3632_v44  ;;  %v3629_v40 = vpop.xlane.xlu0 %3628  ;;  %v4588_v44 = vld [vmem:[%s6641_s8 + $0x1] ss:$0 sm:$0xff] }
0x11b1   :  { %5716 = vrcp.f32 %v3629_v40 }
0x11ba   :  { %v5715_v42 = vpop.eup %5714 }
0x11bb   :  { %v5717_v43 = vpop.eup %5716  ;;  %v3648_v49 = vmul.f32 %v5715_v42, %v5699_v22 }
0x11bc   :  { %v3646_v31 = vmul.f32 %v5717_v43, %v5701_v23 }
0x11be   :  { %5253 = vmatprep.mubr.msk.f32.mxu1 %vm1474_vm5, %v3646_v31 }
0x11bf   :  { %5254 = vmatmul.mubr.msk.f32.vlgmr.msra.gmra.mrb[36].mxu1 %vm1474_vm5, %v3648_v49 }
0x1292   :  { %v5255_v45 = vpop.f32.mrb[36].mxu1 }
0x1293   :  { %v3982_v50 = vadd.f32 %v5255_v45, %v3980_v25  ;;  %v3966_v53 = vpop.f32.mrb[37].mxu1 }
0x1294   :  { %v3981_v55 = vadd.f32 %v3980_v25, %v3966_v53 }
0x1295   :  { %v3984_v52 = vadd.f32 %v3982_v50, %v6275_v61 }
0x1296   :  { %v3983_v54 = vadd.f32 %v3981_v55, %v6273_v59  ;;  %v4583_v59 = vld [vmem:[%s6639_s7 + $0x20] sm:$0xff] }
0x1297   :  { %v3988_v56 = vsel %vm47_vm0, %v3984_v52, 0.0  ;;  %v5593_v4 = vpack.c.bf16 %v4584_v0, %v4583_v59 }
0x1298   :  { %3989 = vadd.xlane.f32.xlu1 %v3988_v56  ;;  %v3985_v19 = vsel %vm47_vm0, %v3983_v54, 0.0 }
0x1299   :  { %3986 = vadd.xlane.f32.xlu0 %v3985_v19  ;;  %5594 = vmatprep.subr.bf16.mxu0 %v5593_v4 }
0x129a   :  { %5596 = vmatpush3.bf16.msra.mxu0 %v5593_v4 }
0x129b   :  { %5598 = vmatprep.subr.bf16.mxu0 %v5597_v3 }
0x129e   :  { %5600 = vmatpush3.bf16.msra.mxu0 %v5597_v3 }
0x129f   :  { %5602 = vmatprep.subr.bf16.mxu0 %v5601_v32 }
0x1325   :  { %v3990_v51 = vpop.xlane.xlu1 %3989 }
0x1326   :  { %v3992_v46 = vmul.f32 0.03125, %v3990_v51  ;;  %v3987_v58 = vpop.xlane.xlu0 %3986 }
0x1327   :  { %v3991_v60 = vmul.f32 0.03125, %v3987_v58 }
0x1328   :  { %v3994_v16 = vsub.f32 %v3984_v52, %v3992_v46 }
0x1329   :  { %v3993_v37 = vsub.f32 %v3983_v54, %v3991_v60 }
0x132a   :  { %v3996_v63 = vmul.f32 %v3994_v16, %v3994_v16 }
0x132b   :  { %v3995_v17 = vmul.f32 %v3993_v37, %v3993_v37 }
0x132c   :  { %v4000_v62 = vsel %vm47_vm0, %v3996_v63, 0.0 }
0x132d   :  { %4001 = vadd.xlane.f32.xlu1 %v4000_v62  ;;  %v3997_v61 = vsel %vm47_vm0, %v3995_v17, 0.0  ;;  %v4147_v62 = vrot.slane %v6537_v18, %v2057_v57 }
0x132e   :  { %3998 = vadd.xlane.f32.xlu0 %v3997_v61 }
0x13ba   :  { %v4002_v8 = vpop.xlane.xlu1 %4001 }
0x13bb   :  { %v4004_v10 = vmul.f32 0.03125, %v4002_v8  ;;  %v3999_v12 = vpop.xlane.xlu0 %3998 }
0x13bc   :  { %v4003_v13 = vmul.f32 0.03125, %v3999_v12 }
0x13bd   :  { %v4006_v14 = vadd.f32 1e-12, %v4004_v10 }
0x13be   :  { %v4005_v11 = vadd.f32 1e-12, %v4003_v13 }
0x13bf   :  { %5718 = vrsqrt.f32 %v4006_v14 }
0x13c0   :  { %5720 = vrsqrt.f32 %v4005_v11 }
0x13c9   :  { %v5719_v20 = vpop.eup %5718 }
0x13ca   :  { %v5721_v21 = vpop.eup %5720  ;;  %v4010_v22 = vmul.f32 %v5719_v20, %v3994_v16 }
0x13cb   :  { %v4009_v23 = vmul.f32 %v5721_v21, %v3993_v37 }
0x13cc   :  { %v4016_v26 = vmul.f32 %v4014_v15, %v4010_v22 }
0x13cd   :  { %v4015_v27 = vmul.f32 %v4014_v15, %v4009_v23  ;;  %v4269_v23 = vld [vmem:[%s6642_s11] sm:$0xff] }
0x13ce   :  { %v4022_v29 = vadd.f32 %v4020_v24, %v4016_v26  ;;  %v4271_v26 = vld [vmem:[%s6642_s11 + $0x10] sm:$0xff] }
0x13cf   :  { %v4021_v28 = vadd.f32 %v4020_v24, %v4015_v27  ;;  %v4270_v24 = vld [vmem:[%s6642_s11 + $0x8] sm:$0xff] }
0x13d0   :  { %v5617_v27 = vpack.c.bf16 %v4270_v24, %v4269_v23 }
0x13d1   :  { %5264 = vmatprep.mubr.msk.f32.mxu0 %vm47_vm0, %v4021_v28 }
0x13d2   :  { %5265 = vmatmul.mubr.msk.f32.vlgmr.msra.gmra.mrb[36].mxu0 %vm47_vm0, %v4022_v29  ;;  %5618 = vmatprep.subr.bf16.mxu1 %v5617_v27 }
0x13d3   :  { %5604 = vmatpush3.bf16.msra.mxu0 %v5601_v32  ;;  %5620 = vmatpush3.bf16.msra.mxu1 %v5617_v27 }
0x13d4   :  { %5606 = vmatprep.subr.bf16.mxu0 %v5605_v5 }
0x13d7   :  { %5608 = vmatpush3.bf16.msra.mxu0 %v5605_v5 }
0x13d8   :  { %5610 = vmatprep.subr.bf16.mxu0 %v5609_v34 }
0x13db   :  { %5612 = vmatpush3.bf16.msra.mxu0 %v5609_v34 }
0x13dc   :  { %5614 = vmatprep.subr.bf16.mxu0 %v5613_v41 }
0x13df   :  { %5616 = vmatpush3.bf16.msra.mxu0 %v5613_v41  ;;  %v4266_v41 = vrot.slane %v6537_v18, %v2177_v48 }
0x14a5   :  { %v5266_v40 = vpop.f32.mrb[36].mxu0 }
0x14a6   :  { %v4114_v42 = vadd.f32 %v5266_v40, %v4588_v44  ;;  %v4108_v43 = vpop.f32.mrb[37].mxu0 }
0x14a7   :  { %v4109_v31 = vadd.f32 %v4588_v44, %v4108_v43 }
0x14a8   :  { %v4120_v49 = vmul.f32 0.044715, %v4114_v42  ;;  %v4118_v37 = vmul.f32 0.5, %v4114_v42 }
0x14a9   :  { %v4119_v25 = vmul.f32 0.044715, %v4109_v31  ;;  %v4117_v60 = vmul.f32 0.5, %v4109_v31 }
0x14aa   :  { %v4122_v45 = vmul.f32 %v4120_v49, %v4114_v42 }
0x14ab   :  { %v4121_v50 = vmul.f32 %v4119_v25, %v4109_v31 }
0x14ac   :  { %v4124_v53 = vmul.f32 %v4122_v45, %v4114_v42 }
0x14ad   :  { %v4123_v55 = vmul.f32 %v4121_v50, %v4109_v31 }
0x14ae   :  { %v4126_v52 = vadd.f32 %v4124_v53, %v4114_v42 }
0x14af   :  { %v4125_v54 = vadd.f32 %v4123_v55, %v4109_v31 }
0x14b0   :  { %v4128_v56 = vmul.f32 0.7978846, %v4126_v52 }
0x14b1   :  { %v4127_v19 = vmul.f32 0.7978846, %v4125_v54 }
0x14b2   :  { %5722 = vtanh.f32 %v4128_v56 }
0x14b3   :  { %5724 = vtanh.f32 %v4127_v19 }
0x14bc   :  { %v5723_v51 = vpop.eup %5722 }
0x14bd   :  { %v5725_v46 = vpop.eup %5724  ;;  %v4132_v58 = vadd.f32 1.0, %v5723_v51 }
0x14be   :  { %v4131_v16 = vadd.f32 1.0, %v5725_v46 }
0x14bf   :  { %v4134_v17 = vmul.f32 %v4132_v58, %v4118_v37 }
0x14c0   :  { %v4133_v63 = vmul.f32 %v4131_v16, %v4117_v60 }
0x14c2   :  { %5283 = vmatprep.mubr.msk.f32.mxu0 %vm2059_vm6, %v4133_v63 }
0x14c3   :  { %5284 = vmatmul.mubr.msk.f32.vlgmr.msra.gmra.mrb[38].mxu0 %vm2059_vm6, %v4134_v17 }
0x1596   :  { %v5285_v61 = vpop.f32.mrb[38].mxu0 }
0x1597   :  { %v4226_v59 = vadd.f32 %v5285_v61, %v4147_v62  ;;  %v4220_v0 = vpop.f32.mrb[39].mxu0 }
0x1598   :  { %v4221_v1 = vadd.f32 %v4220_v0, %v4147_v62 }
0x1599   :  { %v4230_v4 = vadd.f32 %v4226_v59, %v4022_v29 }
0x159a   :  { %v4229_v7 = vadd.f32 %v4221_v1, %v4021_v28  ;;  %v4272_v28 = vld [vmem:[%s6642_s11 + $0x18] sm:$0xff] }
0x159b   :  { %v4234_v3 = vsel %vm47_vm0, %v4230_v4, 0.0  ;;  %v5621_v29 = vpack.c.bf16 %v4272_v28, %v4271_v26 }
0x159c   :  { %4235 = vadd.xlane.f32.xlu1 %v4234_v3  ;;  %v4231_v8 = vsel %vm47_vm0, %v4229_v7, 0.0 }
0x159d   :  { %4232 = vadd.xlane.f32.xlu0 %v4231_v8  ;;  %5622 = vmatprep.subr.bf16.mxu1 %v5621_v29 }
0x159e   :  { %5624 = vmatpush3.bf16.msra.mxu1 %v5621_v29 }
0x1629   :  { %v4236_v10 = vpop.xlane.xlu1 %4235 }
0x162a   :  { %v4238_v12 = vmul.f32 0.03125, %v4236_v10  ;;  %v4233_v13 = vpop.xlane.xlu0 %4232 }
0x162b   :  { %v4237_v14 = vmul.f32 0.03125, %v4233_v13 }
0x162c   :  { %v4240_v11 = vsub.f32 %v4230_v4, %v4238_v12 }
0x162d   :  { %v4239_v15 = vsub.f32 %v4229_v7, %v4237_v14 }
0x162e   :  { %v4242_v20 = vmul.f32 %v4240_v11, %v4240_v11 }
0x162f   :  { %v4241_v57 = vmul.f32 %v4239_v15, %v4239_v15 }
0x1630   :  { %v4246_v21 = vsel %vm47_vm0, %v4242_v20, 0.0 }
0x1631   :  { %4247 = vadd.xlane.f32.xlu1 %v4246_v21  ;;  %v4243_v22 = vsel %vm47_vm0, %v4241_v57, 0.0 }
0x1632   :  { %4244 = vadd.xlane.f32.xlu0 %v4243_v22 }
0x16be   :  { %v4248_v39 = vpop.xlane.xlu1 %4247 }
0x16bf   :  { %v4250_v30 = vmul.f32 0.03125, %v4248_v39  ;;  %v4245_v6 = vpop.xlane.xlu0 %4244 }
0x16c0   :  { %v4249_v32 = vmul.f32 0.03125, %v4245_v6 }
0x16c1   :  { %v4252_v2 = vadd.f32 1e-12, %v4250_v30 }
0x16c2   :  { %v4251_v5 = vadd.f32 1e-12, %v4249_v32 }
0x16c3   :  { %5726 = vrsqrt.f32 %v4252_v2 }
0x16c4   :  { %5728 = vrsqrt.f32 %v4251_v5 }
0x16cd   :  { %v5727_v33 = vpop.eup %5726 }
0x16ce   :  { %v5729_v34 = vpop.eup %5728  ;;  %v4256_v36 = vmul.f32 %v5727_v33, %v4240_v11 }
0x16cf   :  { %v4255_v38 = vmul.f32 %v5729_v34, %v4239_v15 }
0x16d0   :  { %v4262_v44 = vmul.f32 %v4260_v9, %v4256_v36 }
0x16d1   :  { %v4261_v40 = vmul.f32 %v4260_v9, %v4255_v38 }
0x16d2   :  { %v4268_v43 = vadd.f32 %v4266_v41, %v4262_v44 }
0x16d3   :  { %v4267_v42 = vadd.f32 %v4266_v41, %v4261_v40 }
0x16d5   :  { %5294 = vmatprep.mubr.msk.f32.mxu1 %vm47_vm0, %v4267_v42 }
0x16d6   :  { %5295 = vmatmul.mubr.msk.f32.vlgmr.msra.gmra.mrb[38].mxu1 %vm47_vm0, %v4268_v43 }
0x17a9   :  { %v5296_v31 = vpop.f32.mrb[38].mxu1 }
0x17aa   :  { %v4358_v49 = vadd.f32 %v5296_v31, %v4601_v47  ;;  %v4352_v25 = vpop.f32.mrb[39].mxu1 }
0x17ab   :  { %v4353_v45 = vadd.f32 %v4601_v47, %v4352_v25 }
0x17ac   :  { %4362 = vst [vmem:[%s6644_s13 + $0x8] sm:$0xff] %v4358_v49 }
0x17ad   :  { %4361 = vst [vmem:[%s6644_s13] sm:$0xff] %v4353_v45 }

</bundles_post_ra>
